<compile_context>
chip_gen: v7x
topology: tpu7x:2x2x1
jax: 0.10.0
libtpu: 0.0.40
codegen_flags: <defaults>
</compile_context>

<pallas_src>
from functools import partial

import jax
import jax.numpy as jnp
from jax import lax
from jax.experimental import pallas as pl
from jax.experimental.pallas import tpu as pltpu


def _layer_norm_1pass(y, g, b, eps=1e-6):
    """Single-pass LayerNorm over the lane axis (one sum + one sum-of-squares)."""
    inv_d = 1.0 / y.shape[-1]
    s1 = jnp.sum(y, axis=-1, keepdims=True)
    s2 = jnp.sum(y * y, axis=-1, keepdims=True)
    mu = s1 * inv_d
    var = s2 * inv_d - mu * mu
    return (y - mu) * lax.rsqrt(var + eps) * g + b


def encoder_layer_kernel(lens_ref,                      # SMEM (B,) int32 key lengths
                         xq_ref, xkv_ref,               # (tq, D), (tkv, D) f32
                         wq_ref, wk_ref, wv_ref, wfc_ref,   # bf16 weights
                         ln1_g_ref, ln1_b_ref,
                         w1_ref, b1_ref, w2_ref, b2_ref,
                         ln2_g_ref, ln2_b_ref,
                         out_ref,                       # (tq, D)
                         q_sc, m_sc, l_sc, acc_sc,      # VMEM scratch
                         *, n_head, d_k, d_v):
    b = pl.program_id(0)
    ki = pl.program_id(2)
    n_kv = pl.num_programs(2)
    seq_len = lens_ref[b]

    tq = out_ref.shape[0]
    tkv = xkv_ref.shape[0]

    # ---- first KV step for this (batch, q-tile): project Q, reset softmax state.
    @pl.when(ki == 0)
    def _init():
        xq = xq_ref[...].astype(jnp.bfloat16)                              # (tq, D)
        q = jnp.dot(xq, wq_ref[...], preferred_element_type=jnp.float32)  # (tq, H*dk)
        q = jnp.transpose(q.reshape(tq, n_head, d_k), (1, 0, 2))          # (H, tq, dk)
        q_sc[...] = q.astype(jnp.bfloat16)
        m_sc[...] = jnp.full(m_sc.shape, -1e30, jnp.float32)
        l_sc[...] = jnp.zeros(l_sc.shape, jnp.float32)
        acc_sc[...] = jnp.zeros(acc_sc.shape, jnp.float32)

    # ---- project this KV tile (bf16 MXU inputs, f32 accumulation), head-major.
    xkv = xkv_ref[...].astype(jnp.bfloat16)                                # (tkv, D)
    k = jnp.dot(xkv, wk_ref[...], preferred_element_type=jnp.float32)      # (tkv, H*dk)
    v = jnp.dot(xkv, wv_ref[...], preferred_element_type=jnp.float32)      # (tkv, H*dv)
    k = jnp.transpose(k.reshape(tkv, n_head, d_k), (1, 0, 2)).astype(jnp.bfloat16)
    v = jnp.transpose(v.reshape(tkv, n_head, d_v), (1, 0, 2)).astype(jnp.bfloat16)

    # ---- scores for all heads at once (1/sqrt(d_k) already folded into Wq).
    s = jnp.einsum('hqd,hkd->hqk', q_sc[...], k,
                   preferred_element_type=jnp.float32)                     # (H,tq,tkv)

    # Key-padding mask generated in-kernel from prefetched lengths.
    key_pos = ki * tkv + lax.broadcasted_iota(jnp.int32, s.shape, 2)
    s = jnp.where(key_pos < seq_len, s, -1e9)

    # ---- flash-style online softmax over KV tiles.
    m_prev = m_sc[...]
    m_new = jnp.maximum(m_prev, jnp.max(s, axis=-1, keepdims=True))
    alpha = jnp.exp(m_prev - m_new)
    p = jnp.exp(s - m_new)
    l_sc[...] = alpha * l_sc[...] + jnp.sum(p, axis=-1, keepdims=True)
    acc_sc[...] = alpha * acc_sc[...] + jnp.einsum(
        'hqk,hkd->hqd', p.astype(jnp.bfloat16), v,
        preferred_element_type=jnp.float32)
    m_sc[...] = m_new

    # ---- last KV step: finish attention, output proj, LN1, FFN, LN2, store.
    @pl.when(ki == n_kv - 1)
    def _epilogue():
        inv_l = pl.reciprocal(l_sc[...], approx=True)          # EUP slot, ~free
        attn = acc_sc[...] * inv_l                             # (H, tq, dv) f32
        attn = jnp.transpose(attn, (1, 0, 2)).reshape(tq, n_head * d_v)
        o = jnp.dot(attn.astype(jnp.bfloat16), wfc_ref[...],
                    preferred_element_type=jnp.float32)        # (tq, D)
        y = o + xq_ref[...]                                    # residual (f32)
        y = _layer_norm_1pass(y, ln1_g_ref[...], ln1_b_ref[...])

        h1 = jnp.dot(y.astype(jnp.bfloat16), w1_ref[...],
                     preferred_element_type=jnp.float32) + b1_ref[...]
        h1 = jnp.maximum(h1, 0.0)                              # ReLU (f32 VPU)
        f = jnp.dot(h1.astype(jnp.bfloat16), w2_ref[...],
                    preferred_element_type=jnp.float32) + b2_ref[...]
        z = f + y                                              # residual
        z = _layer_norm_1pass(z, ln2_g_ref[...], ln2_b_ref[...])
        out_ref[...] = z.astype(out_ref.dtype)


def transformer_block(x, lengths, params, *, n_head, d_k, d_v,
                      q_tile=None, kv_tile=None):
    """x: [B, L, D] f32, lengths: [B] int (valid key count per batch) -> [B, L, D]."""
    B, L, D = x.shape
    tq = q_tile if q_tile is not None else min(L, 128)
    tkv = kv_tile if kv_tile is not None else min(L, 128)
    assert L % tq == 0 and L % tkv == 0, "L must be divisible by the tile sizes"

    # Parameter prep: bf16 matmul weights (f32 accumulation happens in-kernel),
    # attention scale folded into Wq once. LN params / biases stay f32.
    bf16 = jnp.bfloat16
    weight_args = [
        (params["wq"] * (float(d_k) ** -0.5)).astype(bf16),
        params["wk"].astype(bf16),
        params["wv"].astype(bf16),
        params["wfc"].astype(bf16),
        params["ln1_g"], params["ln1_b"],
        params["w1"].astype(bf16), params["b1"],
        params["w2"].astype(bf16), params["b2"],
        params["ln2_g"], params["ln2_b"],
    ]
    lengths = lengths.astype(jnp.int32)

    def const_spec(shape):
        zeros = (0,) * len(shape)
        return pl.BlockSpec(shape, lambda b, qi, ki, lens, _z=zeros: _z)

    kernel = partial(encoder_layer_kernel, n_head=n_head, d_k=d_k, d_v=d_v)

    return pl.pallas_call(
        kernel,
        out_shape=jax.ShapeDtypeStruct((B, L, D), x.dtype),
        grid_spec=pltpu.PrefetchScalarGridSpec(
            num_scalar_prefetch=1,                    # key lengths -> SMEM
            grid=(B, L // tq, L // tkv),
            in_specs=[
                pl.BlockSpec((pl.Squeezed(), tq, D),
                             lambda b, qi, ki, lens: (b, qi, 0)),   # x, query tile
                pl.BlockSpec((pl.Squeezed(), tkv, D),
                             lambda b, qi, ki, lens: (b, ki, 0)),   # x, kv tile
            ] + [const_spec(w.shape) for w in weight_args],
            out_specs=pl.BlockSpec((pl.Squeezed(), tq, D),
                                   lambda b, qi, ki, lens: (b, qi, 0)),
            scratch_shapes=[
                pltpu.VMEM((n_head, tq, d_k), jnp.bfloat16),   # head-major Q
                pltpu.VMEM((n_head, tq, 1), jnp.float32),      # running max
                pltpu.VMEM((n_head, tq, 1), jnp.float32),      # running denom
                pltpu.VMEM((n_head, tq, d_v), jnp.float32),    # running numerator
            ]),
        compiler_params=pltpu.CompilerParams(
            dimension_semantics=("parallel", "parallel", "arbitrary"),
            vmem_limit_bytes=48 * 1024 * 1024),
    )(lengths, x, x, *weight_args)


# --- pure-JAX f32 reference (mirrors the PyTorch forward; dropout = identity) ---
def _layer_norm_ref(x, g, b, eps=1e-6):
    mu = jnp.mean(x, axis=-1, keepdims=True)
    var = jnp.mean((x - mu) ** 2, axis=-1, keepdims=True)
    return (x - mu) * lax.rsqrt(var + eps) * g + b


def ref_forward(x, mask, p, *, n_head, d_k, d_v):
    HIGH = lax.Precision.HIGHEST
    B, L, D = x.shape
    residual = x
    q = (x @ p["wq"]).reshape(B, L, n_head, d_k).transpose(0, 2, 1, 3)
    k = (x @ p["wk"]).reshape(B, L, n_head, d_k).transpose(0, 2, 1, 3)
    v = (x @ p["wv"]).reshape(B, L, n_head, d_v).transpose(0, 2, 1, 3)
    attn = jnp.einsum("bhqd,bhkd->bhqk", q / (float(d_k) ** 0.5), k, precision=HIGH)
    attn = jnp.where(mask[:, None, :, :] == 0, -1e9, attn)
    attn = jax.nn.softmax(attn, axis=-1)
    o = jnp.einsum("bhqk,bhkd->bhqd", attn, v, precision=HIGH)
    o = o.transpose(0, 2, 1, 3).reshape(B, L, n_head * d_v)
    o = jnp.einsum("blh,ho->blo", o, p["wfc"], precision=HIGH)
    y = _layer_norm_ref(o + residual, p["ln1_g"], p["ln1_b"])
    h1 = jax.nn.relu(jnp.einsum("bld,di->bli", y, p["w1"], precision=HIGH) + p["b1"])
    f = jnp.einsum("bli,id->bld", h1, p["w2"], precision=HIGH) + p["b2"]
    return _layer_norm_ref(f + y, p["ln2_g"], p["ln2_b"])


def init_params(key, d_model, d_inner, n_head, d_k, d_v):
    ks = jax.random.split(key, 6)
    s = 0.05
    return {
        "wq": s * jax.random.normal(ks[0], (d_model, n_head * d_k), jnp.float32),
        "wk": s * jax.random.normal(ks[1], (d_model, n_head * d_k), jnp.float32),
        "wv": s * jax.random.normal(ks[2], (d_model, n_head * d_v), jnp.float32),
        "wfc": s * jax.random.normal(ks[3], (n_head * d_v, d_model), jnp.float32),
        "ln1_g": jnp.ones((1, d_model), jnp.float32),
        "ln1_b": jnp.zeros((1, d_model), jnp.float32),
        "w1": s * jax.random.normal(ks[4], (d_model, d_inner), jnp.float32),
        "b1": jnp.zeros((1, d_inner), jnp.float32),
        "w2": s * jax.random.normal(ks[5], (d_inner, d_model), jnp.float32),
        "b2": jnp.zeros((1, d_model), jnp.float32),
        "ln2_g": jnp.ones((1, d_model), jnp.float32),
        "ln2_b": jnp.zeros((1, d_model), jnp.float32),
    }


if __name__ == "__main__":
    B, L = 2, 8
    d_model, d_inner, n_head, d_k, d_v = 32, 64, 4, 8, 8

    key = jax.random.PRNGKey(0)
    k_x, k_p = jax.random.split(key)
    x = jax.random.normal(k_x, (B, L, d_model), jnp.float32)

    # key-padding: batch 0 attends to all 8 positions, batch 1 to the first 6
    lengths = jnp.array([8, 6], dtype=jnp.int32)
    params = init_params(k_p, d_model, d_inner, n_head, d_k, d_v)

    out = transformer_block(x, lengths, params, n_head=n_head, d_k=d_k, d_v=d_v)
    out = jax.block_until_ready(out)

    key_mask = (jnp.arange(L)[None, :] < lengths[:, None]).astype(jnp.float32)
    mask = jnp.broadcast_to(key_mask[:, None, :], (B, L, L))
    ref = jax.block_until_ready(
        ref_forward(x, mask, params, n_head=n_head, d_k=d_k, d_v=d_v))

    assert out.shape == (B, L, d_model)
    max_err = jnp.max(jnp.abs(out - ref))
    # kernel uses bf16 matmul inputs (f32 accumulation); reference is full f32
    assert jnp.allclose(out, ref, rtol=3e-2, atol=3e-2), f"max abs err {max_err}"
    print("KERNEL_OK")
</pallas_src>

<mosaic_0001>
module attributes {stable_mosaic.version = 11 : i64} {
  func.func @encoder_layer_kernel(%arg0: i32, %arg1: i32, %arg2: i32, %arg3: memref<2xi32, #tpu.memory_space<smem>>, %arg4: memref<1x8x32xf32, #tpu.memory_space<vmem>>, %arg5: memref<1x8x32xf32, #tpu.memory_space<vmem>>, %arg6: memref<32x32xbf16, #tpu.memory_space<vmem>>, %arg7: memref<32x32xbf16, #tpu.memory_space<vmem>>, %arg8: memref<32x32xbf16, #tpu.memory_space<vmem>>, %arg9: memref<32x32xbf16, #tpu.memory_space<vmem>>, %arg10: memref<1x32xf32, #tpu.memory_space<vmem>>, %arg11: memref<1x32xf32, #tpu.memory_space<vmem>>, %arg12: memref<32x64xbf16, #tpu.memory_space<vmem>>, %arg13: memref<1x64xf32, #tpu.memory_space<vmem>>, %arg14: memref<64x32xbf16, #tpu.memory_space<vmem>>, %arg15: memref<1x32xf32, #tpu.memory_space<vmem>>, %arg16: memref<1x32xf32, #tpu.memory_space<vmem>>, %arg17: memref<1x32xf32, #tpu.memory_space<vmem>>, %arg18: memref<1x8x32xf32, #tpu.memory_space<vmem>>, %arg19: memref<4x8x8xbf16, #tpu.memory_space<vmem>>, %arg20: memref<4x8x1xf32, #tpu.memory_space<vmem>>, %arg21: memref<4x8x1xf32, #tpu.memory_space<vmem>>, %arg22: memref<4x8x8xf32, #tpu.memory_space<vmem>>) attributes {dimension_semantics = [#tpu.dimension_semantics<parallel>, #tpu.dimension_semantics<parallel>, #tpu.dimension_semantics<arbitrary>], iteration_bounds = array<i64: 2, 1, 1>, scalar_prefetch = 1 : i64, scratch_operands = 4 : i64, tpu.core_type = #tpu.core_type<tc>, window_params = [{transform_indices = @transform_0, window_bounds = array<i64: 1, 8, 32>}, {transform_indices = @transform_1, window_bounds = array<i64: 1, 8, 32>}, {pipeline_mode = #tpu.pipeline_mode<synchronous>, transform_indices = @transform_2, window_bounds = array<i64: 32, 32>}, {pipeline_mode = #tpu.pipeline_mode<synchronous>, transform_indices = @transform_3, window_bounds = array<i64: 32, 32>}, {pipeline_mode = #tpu.pipeline_mode<synchronous>, transform_indices = @transform_4, window_bounds = array<i64: 32, 32>}, {pipeline_mode = #tpu.pipeline_mode<synchronous>, transform_indices = @transform_5, window_bounds = array<i64: 32, 32>}, {pipeline_mode = #tpu.pipeline_mode<synchronous>, transform_indices = @transform_6, window_bounds = array<i64: 1, 32>}, {pipeline_mode = #tpu.pipeline_mode<synchronous>, transform_indices = @transform_7, window_bounds = array<i64: 1, 32>}, {pipeline_mode = #tpu.pipeline_mode<synchronous>, transform_indices = @transform_8, window_bounds = array<i64: 32, 64>}, {pipeline_mode = #tpu.pipeline_mode<synchronous>, transform_indices = @transform_9, window_bounds = array<i64: 1, 64>}, {pipeline_mode = #tpu.pipeline_mode<synchronous>, transform_indices = @transform_10, window_bounds = array<i64: 64, 32>}, {pipeline_mode = #tpu.pipeline_mode<synchronous>, transform_indices = @transform_11, window_bounds = array<i64: 1, 32>}, {pipeline_mode = #tpu.pipeline_mode<synchronous>, transform_indices = @transform_12, window_bounds = array<i64: 1, 32>}, {pipeline_mode = #tpu.pipeline_mode<synchronous>, transform_indices = @transform_13, window_bounds = array<i64: 1, 32>}, {transform_indices = @transform_14, window_bounds = array<i64: 1, 8, 32>}]} {
    %0 = arith.index_cast %arg0 : i32 to index
    %1 = memref.load %arg3[%0] : memref<2xi32, #tpu.memory_space<smem>>
    %c0_i32 = arith.constant 0 : i32
    %2 = arith.cmpi eq, %arg2, %c0_i32 : i32
    %3 = arith.extui %2 : i1 to i32
    %c0_i32_0 = arith.constant 0 : i32
    %4 = arith.cmpi ne, %3, %c0_i32_0 : i32
    scf.if %4 {
      %c0_36 = arith.constant 0 : index
      %c0_37 = arith.constant 0 : index
      %c0_38 = arith.constant 0 : index
      %54 = vector.load %arg4[%c0_36, %c0_37, %c0_38] : memref<1x8x32xf32, #tpu.memory_space<vmem>>, vector<1x8x32xf32>
      %55 = vector.shape_cast %54 : vector<1x8x32xf32> to vector<8x32xf32>
      %56 = arith.truncf %55 : vector<8x32xf32> to vector<8x32xbf16>
      %c0_39 = arith.constant 0 : index
      %c0_40 = arith.constant 0 : index
      %57 = vector.load %arg6[%c0_39, %c0_40] : memref<32x32xbf16, #tpu.memory_space<vmem>>, vector<32x32xbf16>
      %cst_41 = arith.constant dense<0.000000e+00> : vector<8x32xf32>
      %58 = tpu.matmul %56, %57, %cst_41 {dimension_numbers = #tpu.dot_dimension_numbers<[1], [0], [0], [1], [0, 0, 1, 1], [], []>} : vector<8x32xbf16>, vector<32x32xbf16>, vector<8x32xf32> -> vector<8x32xf32>
      %59 = vector.shape_cast %58 : vector<8x32xf32> to vector<8x4x8xf32>
      %60 = tpu.transpose %59, [1, 0, 2] : vector<8x4x8xf32> -> vector<4x8x8xf32>
      %61 = arith.truncf %60 : vector<4x8x8xf32> to vector<4x8x8xbf16>
      %c0_42 = arith.constant 0 : index
      %c0_43 = arith.constant 0 : index
      %c0_44 = arith.constant 0 : index
      %62 = vector.load %arg19[%c0_42, %c0_43, %c0_44] : memref<4x8x8xbf16, #tpu.memory_space<vmem>>, vector<4x8x8xbf16>
      tpu.vector_store %arg19[%c0_42, %c0_43, %c0_44], %61 {strides = array<i32>} : memref<4x8x8xbf16, #tpu.memory_space<vmem>>, vector<4x8x8xbf16>,
      %cst_45 = arith.constant -1.000000e+30 : f32
      %63 = vector.broadcast %cst_45 : f32 to vector<4x8x1xf32>
      %c0_46 = arith.constant 0 : index
      %c0_47 = arith.constant 0 : index
      %c0_48 = arith.constant 0 : index
      %64 = vector.load %arg20[%c0_46, %c0_47, %c0_48] : memref<4x8x1xf32, #tpu.memory_space<vmem>>, vector<4x8x1xf32>
      tpu.vector_store %arg20[%c0_46, %c0_47, %c0_48], %63 {strides = array<i32>} : memref<4x8x1xf32, #tpu.memory_space<vmem>>, vector<4x8x1xf32>,
      %cst_49 = arith.constant 0.000000e+00 : f32
      %65 = vector.broadcast %cst_49 : f32 to vector<4x8x1xf32>
      %c0_50 = arith.constant 0 : index
      %c0_51 = arith.constant 0 : index
      %c0_52 = arith.constant 0 : index
      %66 = vector.load %arg21[%c0_50, %c0_51, %c0_52] : memref<4x8x1xf32, #tpu.memory_space<vmem>>, vector<4x8x1xf32>
      tpu.vector_store %arg21[%c0_50, %c0_51, %c0_52], %65 {strides = array<i32>} : memref<4x8x1xf32, #tpu.memory_space<vmem>>, vector<4x8x1xf32>,
      %cst_53 = arith.constant 0.000000e+00 : f32
      %67 = vector.broadcast %cst_53 : f32 to vector<4x8x8xf32>
      %c0_54 = arith.constant 0 : index
      %c0_55 = arith.constant 0 : index
      %c0_56 = arith.constant 0 : index
      %68 = vector.load %arg22[%c0_54, %c0_55, %c0_56] : memref<4x8x8xf32, #tpu.memory_space<vmem>>, vector<4x8x8xf32>
      tpu.vector_store %arg22[%c0_54, %c0_55, %c0_56], %67 {strides = array<i32>} : memref<4x8x8xf32, #tpu.memory_space<vmem>>, vector<4x8x8xf32>,
    } else {
    }
    %c0 = arith.constant 0 : index
    %c0_1 = arith.constant 0 : index
    %c0_2 = arith.constant 0 : index
    %5 = vector.load %arg5[%c0, %c0_1, %c0_2] : memref<1x8x32xf32, #tpu.memory_space<vmem>>, vector<1x8x32xf32>
    %6 = vector.shape_cast %5 : vector<1x8x32xf32> to vector<8x32xf32>
    %7 = arith.truncf %6 : vector<8x32xf32> to vector<8x32xbf16>
    %c0_3 = arith.constant 0 : index
    %c0_4 = arith.constant 0 : index
    %8 = vector.load %arg7[%c0_3, %c0_4] : memref<32x32xbf16, #tpu.memory_space<vmem>>, vector<32x32xbf16>
    %cst = arith.constant dense<0.000000e+00> : vector<8x32xf32>
    %9 = tpu.matmul %7, %8, %cst {dimension_numbers = #tpu.dot_dimension_numbers<[1], [0], [0], [1], [0, 0, 1, 1], [], []>} : vector<8x32xbf16>, vector<32x32xbf16>, vector<8x32xf32> -> vector<8x32xf32>
    %c0_5 = arith.constant 0 : index
    %c0_6 = arith.constant 0 : index
    %10 = vector.load %arg8[%c0_5, %c0_6] : memref<32x32xbf16, #tpu.memory_space<vmem>>, vector<32x32xbf16>
    %cst_7 = arith.constant dense<0.000000e+00> : vector<8x32xf32>
    %11 = tpu.matmul %7, %10, %cst_7 {dimension_numbers = #tpu.dot_dimension_numbers<[1], [0], [0], [1], [0, 0, 1, 1], [], []>} : vector<8x32xbf16>, vector<32x32xbf16>, vector<8x32xf32> -> vector<8x32xf32>
    %12 = vector.shape_cast %9 : vector<8x32xf32> to vector<8x4x8xf32>
    %13 = tpu.transpose %12, [1, 0, 2] : vector<8x4x8xf32> -> vector<4x8x8xf32>
    %14 = arith.truncf %13 : vector<4x8x8xf32> to vector<4x8x8xbf16>
    %15 = vector.shape_cast %11 : vector<8x32xf32> to vector<8x4x8xf32>
    %16 = tpu.transpose %15, [1, 0, 2] : vector<8x4x8xf32> -> vector<4x8x8xf32>
    %17 = arith.truncf %16 : vector<4x8x8xf32> to vector<4x8x8xbf16>
    %c0_8 = arith.constant 0 : index
    %c0_9 = arith.constant 0 : index
    %c0_10 = arith.constant 0 : index
    %18 = vector.load %arg19[%c0_8, %c0_9, %c0_10] : memref<4x8x8xbf16, #tpu.memory_space<vmem>>, vector<4x8x8xbf16>
    "tpu.trace_start"() <{level = 10 : i32, message = "hqd,hkd->hqk"}> : () -> ()
    %cst_11 = arith.constant dense<0.000000e+00> : vector<4x8x8xf32>
    %19 = tpu.matmul %18, %14, %cst_11 {dimension_numbers = #tpu.dot_dimension_numbers<[2], [2], [1], [1], [0, 0, 0, 1, 1, 1], [0], [0]>} : vector<4x8x8xbf16>, vector<4x8x8xbf16>, vector<4x8x8xf32> -> vector<4x8x8xf32>
    "tpu.trace_stop"() : () -> ()
    %c8_i32 = arith.constant 8 : i32
    %20 = arith.muli %arg2, %c8_i32 : i32
    %21 = tpu.iota {dimensions = array<i32: 2>} : vector<4x8x8xi32>
    %22 = vector.broadcast %20 : i32 to vector<4x8x8xi32>
    %23 = arith.addi %22, %21 : vector<4x8x8xi32>
    %24 = vector.broadcast %1 : i32 to vector<4x8x8xi32>
    %25 = arith.cmpi slt, %23, %24 : vector<4x8x8xi32>
    %cst_12 = arith.constant -1.000000e+09 : f32
    %26 = vector.broadcast %cst_12 : f32 to vector<4x8x8xf32>
    %27 = arith.select %25, %19, %26 : vector<4x8x8xi1>, vector<4x8x8xf32>
    %c0_13 = arith.constant 0 : index
    %c0_14 = arith.constant 0 : index
    %c0_15 = arith.constant 0 : index
    %28 = vector.load %arg20[%c0_13, %c0_14, %c0_15] : memref<4x8x1xf32, #tpu.memory_space<vmem>>, vector<4x8x1xf32>
    %cst_16 = arith.constant dense<0xFF800000> : vector<4x8xf32>
    %29 = vector.multi_reduction <maximumf>, %27, %cst_16 [2] : vector<4x8x8xf32> to vector<4x8xf32>
    %30 = vector.shape_cast %29 : vector<4x8xf32> to vector<4x8x1xf32>
    %31 = arith.maximumf %28, %30 : vector<4x8x1xf32>
    %32 = arith.subf %28, %31 : vector<4x8x1xf32>
    %33 = math.exp %32 : vector<4x8x1xf32>
    %34 = vector.broadcast %31 : vector<4x8x1xf32> to vector<4x8x8xf32>
    %35 = arith.subf %27, %34 : vector<4x8x8xf32>
    %36 = math.exp %35 : vector<4x8x8xf32>
    %c0_17 = arith.constant 0 : index
    %c0_18 = arith.constant 0 : index
    %c0_19 = arith.constant 0 : index
    %37 = vector.load %arg21[%c0_17, %c0_18, %c0_19] : memref<4x8x1xf32, #tpu.memory_space<vmem>>, vector<4x8x1xf32>
    %38 = arith.mulf %33, %37 : vector<4x8x1xf32>
    %cst_20 = arith.constant dense<0.000000e+00> : vector<4x8xf32>
    %39 = vector.multi_reduction <add>, %36, %cst_20 [2] : vector<4x8x8xf32> to vector<4x8xf32>
    %40 = vector.shape_cast %39 : vector<4x8xf32> to vector<4x8x1xf32>
    %41 = arith.addf %38, %40 : vector<4x8x1xf32>
    %c0_21 = arith.constant 0 : index
    %c0_22 = arith.constant 0 : index
    %c0_23 = arith.constant 0 : index
    %42 = vector.load %arg21[%c0_21, %c0_22, %c0_23] : memref<4x8x1xf32, #tpu.memory_space<vmem>>, vector<4x8x1xf32>
    tpu.vector_store %arg21[%c0_21, %c0_22, %c0_23], %41 {strides = array<i32>} : memref<4x8x1xf32, #tpu.memory_space<vmem>>, vector<4x8x1xf32>,
    %c0_24 = arith.constant 0 : index
    %c0_25 = arith.constant 0 : index
    %c0_26 = arith.constant 0 : index
    %43 = vector.load %arg22[%c0_24, %c0_25, %c0_26] : memref<4x8x8xf32, #tpu.memory_space<vmem>>, vector<4x8x8xf32>
    %44 = vector.broadcast %33 : vector<4x8x1xf32> to vector<4x8x8xf32>
    %45 = arith.mulf %44, %43 : vector<4x8x8xf32>
    %46 = arith.truncf %36 : vector<4x8x8xf32> to vector<4x8x8xbf16>
    "tpu.trace_start"() <{level = 10 : i32, message = "hqk,hkd->hqd"}> : () -> ()
    %cst_27 = arith.constant dense<0.000000e+00> : vector<4x8x8xf32>
    %47 = tpu.matmul %46, %17, %cst_27 {dimension_numbers = #tpu.dot_dimension_numbers<[2], [1], [1], [2], [0, 0, 0, 1, 1, 2], [0], [0]>} : vector<4x8x8xbf16>, vector<4x8x8xbf16>, vector<4x8x8xf32> -> vector<4x8x8xf32>
    "tpu.trace_stop"() : () -> ()
    %48 = arith.addf %45, %47 : vector<4x8x8xf32>
    %c0_28 = arith.constant 0 : index
    %c0_29 = arith.constant 0 : index
    %c0_30 = arith.constant 0 : index
    %49 = vector.load %arg22[%c0_28, %c0_29, %c0_30] : memref<4x8x8xf32, #tpu.memory_space<vmem>>, vector<4x8x8xf32>
    tpu.vector_store %arg22[%c0_28, %c0_29, %c0_30], %48 {strides = array<i32>} : memref<4x8x8xf32, #tpu.memory_space<vmem>>, vector<4x8x8xf32>,
    %c0_31 = arith.constant 0 : index
    %c0_32 = arith.constant 0 : index
    %c0_33 = arith.constant 0 : index
    %50 = vector.load %arg20[%c0_31, %c0_32, %c0_33] : memref<4x8x1xf32, #tpu.memory_space<vmem>>, vector<4x8x1xf32>
    tpu.vector_store %arg20[%c0_31, %c0_32, %c0_33], %31 {strides = array<i32>} : memref<4x8x1xf32, #tpu.memory_space<vmem>>, vector<4x8x1xf32>,
    %c0_i32_34 = arith.constant 0 : i32
    %51 = arith.cmpi eq, %arg2, %c0_i32_34 : i32
    %52 = arith.extui %51 : i1 to i32
    %c0_i32_35 = arith.constant 0 : i32
    %53 = arith.cmpi ne, %52, %c0_i32_35 : i32
    scf.if %53 {
      %c0_36 = arith.constant 0 : index
      %c0_37 = arith.constant 0 : index
      %c0_38 = arith.constant 0 : index
      %54 = vector.load %arg21[%c0_36, %c0_37, %c0_38] : memref<4x8x1xf32, #tpu.memory_space<vmem>>, vector<4x8x1xf32>
      %55 = tpu.reciprocal %54 {approx = true} : vector<4x8x1xf32> -> vector<4x8x1xf32>
      %c0_39 = arith.constant 0 : index
      %c0_40 = arith.constant 0 : index
      %c0_41 = arith.constant 0 : index
      %56 = vector.load %arg22[%c0_39, %c0_40, %c0_41] : memref<4x8x8xf32, #tpu.memory_space<vmem>>, vector<4x8x8xf32>
      %57 = vector.broadcast %55 : vector<4x8x1xf32> to vector<4x8x8xf32>
      %58 = arith.mulf %56, %57 : vector<4x8x8xf32>
      %59 = tpu.transpose %58, [1, 0, 2] : vector<4x8x8xf32> -> vector<8x4x8xf32>
      %60 = vector.shape_cast %59 : vector<8x4x8xf32> to vector<8x32xf32>
      %61 = arith.truncf %60 : vector<8x32xf32> to vector<8x32xbf16>
      %c0_42 = arith.constant 0 : index
      %c0_43 = arith.constant 0 : index
      %62 = vector.load %arg9[%c0_42, %c0_43] : memref<32x32xbf16, #tpu.memory_space<vmem>>, vector<32x32xbf16>
      %cst_44 = arith.constant dense<0.000000e+00> : vector<8x32xf32>
      %63 = tpu.matmul %61, %62, %cst_44 {dimension_numbers = #tpu.dot_dimension_numbers<[1], [0], [0], [1], [0, 0, 1, 1], [], []>} : vector<8x32xbf16>, vector<32x32xbf16>, vector<8x32xf32> -> vector<8x32xf32>
      %c0_45 = arith.constant 0 : index
      %c0_46 = arith.constant 0 : index
      %c0_47 = arith.constant 0 : index
      %64 = vector.load %arg4[%c0_45, %c0_46, %c0_47] : memref<1x8x32xf32, #tpu.memory_space<vmem>>, vector<1x8x32xf32>
      %65 = vector.shape_cast %64 : vector<1x8x32xf32> to vector<8x32xf32>
      %66 = arith.addf %63, %65 : vector<8x32xf32>
      %c0_48 = arith.constant 0 : index
      %c0_49 = arith.constant 0 : index
      %67 = vector.load %arg10[%c0_48, %c0_49] : memref<1x32xf32, #tpu.memory_space<vmem>>, vector<1x32xf32>
      %c0_50 = arith.constant 0 : index
      %c0_51 = arith.constant 0 : index
      %68 = vector.load %arg11[%c0_50, %c0_51] : memref<1x32xf32, #tpu.memory_space<vmem>>, vector<1x32xf32>
      %cst_52 = arith.constant dense<0.000000e+00> : vector<8xf32>
      %69 = vector.multi_reduction <add>, %66, %cst_52 [1] : vector<8x32xf32> to vector<8xf32>
      %70 = vector.shape_cast %69 : vector<8xf32> to vector<8x1xf32>
      %71 = arith.mulf %66, %66 : vector<8x32xf32>
      %cst_53 = arith.constant dense<0.000000e+00> : vector<8xf32>
      %72 = vector.multi_reduction <add>, %71, %cst_53 [1] : vector<8x32xf32> to vector<8xf32>
      %73 = vector.shape_cast %72 : vector<8xf32> to vector<8x1xf32>
      %cst_54 = arith.constant 3.125000e-02 : f32
      %74 = vector.broadcast %cst_54 : f32 to vector<8x1xf32>
      %75 = arith.mulf %70, %74 : vector<8x1xf32>
      %cst_55 = arith.constant 3.125000e-02 : f32
      %76 = vector.broadcast %cst_55 : f32 to vector<8x1xf32>
      %77 = arith.mulf %73, %76 : vector<8x1xf32>
      %78 = arith.mulf %75, %75 : vector<8x1xf32>
      %79 = arith.subf %77, %78 : vector<8x1xf32>
      %80 = vector.broadcast %75 : vector<8x1xf32> to vector<8x32xf32>
      %81 = arith.subf %66, %80 : vector<8x32xf32>
      %cst_56 = arith.constant 9.99999997E-7 : f32
      %82 = vector.broadcast %cst_56 : f32 to vector<8x1xf32>
      %83 = arith.addf %79, %82 : vector<8x1xf32>
      %84 = math.rsqrt %83 : vector<8x1xf32>
      %85 = vector.broadcast %84 : vector<8x1xf32> to vector<8x32xf32>
      %86 = arith.mulf %81, %85 : vector<8x32xf32>
      %87 = vector.broadcast %67 : vector<1x32xf32> to vector<8x32xf32>
      %88 = arith.mulf %86, %87 : vector<8x32xf32>
      %89 = vector.broadcast %68 : vector<1x32xf32> to vector<8x32xf32>
      %90 = arith.addf %88, %89 : vector<8x32xf32>
      %91 = arith.truncf %90 : vector<8x32xf32> to vector<8x32xbf16>
      %c0_57 = arith.constant 0 : index
      %c0_58 = arith.constant 0 : index
      %92 = vector.load %arg12[%c0_57, %c0_58] : memref<32x64xbf16, #tpu.memory_space<vmem>>, vector<32x64xbf16>
      %cst_59 = arith.constant dense<0.000000e+00> : vector<8x64xf32>
      %93 = tpu.matmul %91, %92, %cst_59 {dimension_numbers = #tpu.dot_dimension_numbers<[1], [0], [0], [1], [0, 0, 1, 1], [], []>} : vector<8x32xbf16>, vector<32x64xbf16>, vector<8x64xf32> -> vector<8x64xf32>
      %c0_60 = arith.constant 0 : index
      %c0_61 = arith.constant 0 : index
      %94 = vector.load %arg13[%c0_60, %c0_61] : memref<1x64xf32, #tpu.memory_space<vmem>>, vector<1x64xf32>
      %95 = vector.broadcast %94 : vector<1x64xf32> to vector<8x64xf32>
      %96 = arith.addf %93, %95 : vector<8x64xf32>
      %cst_62 = arith.constant 0.000000e+00 : f32
      %97 = vector.broadcast %cst_62 : f32 to vector<8x64xf32>
      %98 = arith.maximumf %96, %97 : vector<8x64xf32>
      %99 = arith.truncf %98 : vector<8x64xf32> to vector<8x64xbf16>
      %c0_63 = arith.constant 0 : index
      %c0_64 = arith.constant 0 : index
      %100 = vector.load %arg14[%c0_63, %c0_64] : memref<64x32xbf16, #tpu.memory_space<vmem>>, vector<64x32xbf16>
      %cst_65 = arith.constant dense<0.000000e+00> : vector<8x32xf32>
      %101 = tpu.matmul %99, %100, %cst_65 {dimension_numbers = #tpu.dot_dimension_numbers<[1], [0], [0], [1], [0, 0, 1, 1], [], []>} : vector<8x64xbf16>, vector<64x32xbf16>, vector<8x32xf32> -> vector<8x32xf32>
      %c0_66 = arith.constant 0 : index
      %c0_67 = arith.constant 0 : index
      %102 = vector.load %arg15[%c0_66, %c0_67] : memref<1x32xf32, #tpu.memory_space<vmem>>, vector<1x32xf32>
      %103 = vector.broadcast %102 : vector<1x32xf32> to vector<8x32xf32>
      %104 = arith.addf %101, %103 : vector<8x32xf32>
      %105 = arith.addf %104, %90 : vector<8x32xf32>
      %c0_68 = arith.constant 0 : index
      %c0_69 = arith.constant 0 : index
      %106 = vector.load %arg16[%c0_68, %c0_69] : memref<1x32xf32, #tpu.memory_space<vmem>>, vector<1x32xf32>
      %c0_70 = arith.constant 0 : index
      %c0_71 = arith.constant 0 : index
      %107 = vector.load %arg17[%c0_70, %c0_71] : memref<1x32xf32, #tpu.memory_space<vmem>>, vector<1x32xf32>
      %cst_72 = arith.constant dense<0.000000e+00> : vector<8xf32>
      %108 = vector.multi_reduction <add>, %105, %cst_72 [1] : vector<8x32xf32> to vector<8xf32>
      %109 = vector.shape_cast %108 : vector<8xf32> to vector<8x1xf32>
      %110 = arith.mulf %105, %105 : vector<8x32xf32>
      %cst_73 = arith.constant dense<0.000000e+00> : vector<8xf32>
      %111 = vector.multi_reduction <add>, %110, %cst_73 [1] : vector<8x32xf32> to vector<8xf32>
      %112 = vector.shape_cast %111 : vector<8xf32> to vector<8x1xf32>
      %cst_74 = arith.constant 3.125000e-02 : f32
      %113 = vector.broadcast %cst_74 : f32 to vector<8x1xf32>
      %114 = arith.mulf %109, %113 : vector<8x1xf32>
      %cst_75 = arith.constant 3.125000e-02 : f32
      %115 = vector.broadcast %cst_75 : f32 to vector<8x1xf32>
      %116 = arith.mulf %112, %115 : vector<8x1xf32>
      %117 = arith.mulf %114, %114 : vector<8x1xf32>
      %118 = arith.subf %116, %117 : vector<8x1xf32>
      %119 = vector.broadcast %114 : vector<8x1xf32> to vector<8x32xf32>
      %120 = arith.subf %105, %119 : vector<8x32xf32>
      %cst_76 = arith.constant 9.99999997E-7 : f32
      %121 = vector.broadcast %cst_76 : f32 to vector<8x1xf32>
      %122 = arith.addf %118, %121 : vector<8x1xf32>
      %123 = math.rsqrt %122 : vector<8x1xf32>
      %124 = vector.broadcast %123 : vector<8x1xf32> to vector<8x32xf32>
      %125 = arith.mulf %120, %124 : vector<8x32xf32>
      %126 = vector.broadcast %106 : vector<1x32xf32> to vector<8x32xf32>
      %127 = arith.mulf %125, %126 : vector<8x32xf32>
      %128 = vector.broadcast %107 : vector<1x32xf32> to vector<8x32xf32>
      %129 = arith.addf %127, %128 : vector<8x32xf32>
      %c0_77 = arith.constant 0 : index
      %c0_78 = arith.constant 0 : index
      %c0_79 = arith.constant 0 : index
      %130 = vector.load %arg18[%c0_77, %c0_78, %c0_79] : memref<1x8x32xf32, #tpu.memory_space<vmem>>, vector<1x8x32xf32>
      %131 = vector.shape_cast %130 : vector<1x8x32xf32> to vector<8x32xf32>
      %132 = vector.shape_cast %129 : vector<8x32xf32> to vector<1x8x32xf32>
      tpu.vector_store %arg18[%c0_77, %c0_78, %c0_79], %132 {strides = array<i32>} : memref<1x8x32xf32, #tpu.memory_space<vmem>>, vector<1x8x32xf32>,
    } else {
    }
    return
  }
  func.func @transform_0(%arg0: i32, %arg1: i32, %arg2: i32, %arg3: memref<2xi32, #tpu.memory_space<smem>>) -> (i32, i32, i32) {
    %c0_i32 = arith.constant 0 : i32
    %c0_i32_0 = arith.constant 0 : i32
    return %arg0, %arg1, %c0_i32 : i32, i32, i32
  }
  func.func @transform_1(%arg0: i32, %arg1: i32, %arg2: i32, %arg3: memref<2xi32, #tpu.memory_space<smem>>) -> (i32, i32, i32) {
    %c0_i32 = arith.constant 0 : i32
    %c0_i32_0 = arith.constant 0 : i32
    return %arg0, %arg2, %c0_i32 : i32, i32, i32
  }
  func.func @transform_2(%arg0: i32, %arg1: i32, %arg2: i32, %arg3: memref<2xi32, #tpu.memory_space<smem>>) -> (i32, i32) {
    %c0_i32 = arith.constant 0 : i32
    %c0_i32_0 = arith.constant 0 : i32
    %c0_i32_1 = arith.constant 0 : i32
    return %c0_i32, %c0_i32_0 : i32, i32
  }
  func.func @transform_3(%arg0: i32, %arg1: i32, %arg2: i32, %arg3: memref<2xi32, #tpu.memory_space<smem>>) -> (i32, i32) {
    %c0_i32 = arith.constant 0 : i32
    %c0_i32_0 = arith.constant 0 : i32
    %c0_i32_1 = arith.constant 0 : i32
    return %c0_i32, %c0_i32_0 : i32, i32
  }
  func.func @transform_4(%arg0: i32, %arg1: i32, %arg2: i32, %arg3: memref<2xi32, #tpu.memory_space<smem>>) -> (i32, i32) {
    %c0_i32 = arith.constant 0 : i32
    %c0_i32_0 = arith.constant 0 : i32
    %c0_i32_1 = arith.constant 0 : i32
    return %c0_i32, %c0_i32_0 : i32, i32
  }
  func.func @transform_5(%arg0: i32, %arg1: i32, %arg2: i32, %arg3: memref<2xi32, #tpu.memory_space<smem>>) -> (i32, i32) {
    %c0_i32 = arith.constant 0 : i32
    %c0_i32_0 = arith.constant 0 : i32
    %c0_i32_1 = arith.constant 0 : i32
    return %c0_i32, %c0_i32_0 : i32, i32
  }
  func.func @transform_6(%arg0: i32, %arg1: i32, %arg2: i32, %arg3: memref<2xi32, #tpu.memory_space<smem>>) -> (i32, i32) {
    %c0_i32 = arith.constant 0 : i32
    %c0_i32_0 = arith.constant 0 : i32
    %c0_i32_1 = arith.constant 0 : i32
    return %c0_i32, %c0_i32_0 : i32, i32
  }
  func.func @transform_7(%arg0: i32, %arg1: i32, %arg2: i32, %arg3: memref<2xi32, #tpu.memory_space<smem>>) -> (i32, i32) {
    %c0_i32 = arith.constant 0 : i32
    %c0_i32_0 = arith.constant 0 : i32
    %c0_i32_1 = arith.constant 0 : i32
    return %c0_i32, %c0_i32_0 : i32, i32
  }
  func.func @transform_8(%arg0: i32, %arg1: i32, %arg2: i32, %arg3: memref<2xi32, #tpu.memory_space<smem>>) -> (i32, i32) {
    %c0_i32 = arith.constant 0 : i32
    %c0_i32_0 = arith.constant 0 : i32
    %c0_i32_1 = arith.constant 0 : i32
    return %c0_i32, %c0_i32_0 : i32, i32
  }
  func.func @transform_9(%arg0: i32, %arg1: i32, %arg2: i32, %arg3: memref<2xi32, #tpu.memory_space<smem>>) -> (i32, i32) {
    %c0_i32 = arith.constant 0 : i32
    %c0_i32_0 = arith.constant 0 : i32
    %c0_i32_1 = arith.constant 0 : i32
    return %c0_i32, %c0_i32_0 : i32, i32
  }
  func.func @transform_10(%arg0: i32, %arg1: i32, %arg2: i32, %arg3: memref<2xi32, #tpu.memory_space<smem>>) -> (i32, i32) {
    %c0_i32 = arith.constant 0 : i32
    %c0_i32_0 = arith.constant 0 : i32
    %c0_i32_1 = arith.constant 0 : i32
    return %c0_i32, %c0_i32_0 : i32, i32
  }
  func.func @transform_11(%arg0: i32, %arg1: i32, %arg2: i32, %arg3: memref<2xi32, #tpu.memory_space<smem>>) -> (i32, i32) {
    %c0_i32 = arith.constant 0 : i32
    %c0_i32_0 = arith.constant 0 : i32
    %c0_i32_1 = arith.constant 0 : i32
    return %c0_i32, %c0_i32_0 : i32, i32
  }
  func.func @transform_12(%arg0: i32, %arg1: i32, %arg2: i32, %arg3: memref<2xi32, #tpu.memory_space<smem>>) -> (i32, i32) {
    %c0_i32 = arith.constant 0 : i32
    %c0_i32_0 = arith.constant 0 : i32
    %c0_i32_1 = arith.constant 0 : i32
    return %c0_i32, %c0_i32_0 : i32, i32
  }
  func.func @transform_13(%arg0: i32, %arg1: i32, %arg2: i32, %arg3: memref<2xi32, #tpu.memory_space<smem>>) -> (i32, i32) {
    %c0_i32 = arith.constant 0 : i32
    %c0_i32_0 = arith.constant 0 : i32
    %c0_i32_1 = arith.constant 0 : i32
    return %c0_i32, %c0_i32_0 : i32, i32
  }
  func.func @transform_14(%arg0: i32, %arg1: i32, %arg2: i32, %arg3: memref<2xi32, #tpu.memory_space<smem>>) -> (i32, i32, i32) {
    %c0_i32 = arith.constant 0 : i32
    %c0_i32_0 = arith.constant 0 : i32
    return %arg0, %arg1, %c0_i32 : i32, i32, i32
  }
}

</mosaic_0001>

<bundles_post_ra>
// kernel: tpu_custom_call.1
= control target key start
LH: loop header
LB: loop body
LE: loop exit
PB: predicated region body
PF: predicated region fallthrough
CT: control target
= control target key end

     0   :  { %s3533_s0 = inlined_call_operand.hbm [shape: s32[2], index: 0, kind: input, shape index: {}]   ;;  %s3534_s1 = inlined_call_operand.vmem [shape: f32[2,8,32], index: 1, kind: input, shape index: {}]   ;;  %s3535_s2 = inlined_call_operand.vmem [shape: f32[2,8,32], index: 2, kind: input, shape index: {}]   ;;  %s3536_s3 = inlined_call_operand.vmem [shape: bf16[32,32], index: 3, kind: input, shape index: {}]   ;;  %s3537_s4 = inlined_call_operand.hbm [shape: bf16[32,32], index: 4, kind: input, shape index: {}]   ;;  %s3538_s5 = inlined_call_operand.hbm [shape: bf16[32,32], index: 5, kind: input, shape index: {}]   ;;  %s3539_s6 = inlined_call_operand.hbm [shape: bf16[32,32], index: 6, kind: input, shape index: {}]   ;;  %s3540_s7 = inlined_call_operand.vmem [shape: f32[1,32], index: 7, kind: input, shape index: {}]   ;;  %s3541_s8 = inlined_call_operand.vmem [shape: f32[1,32], index: 8, kind: input, shape index: {}]   ;;  %s3542_s9 = inlined_call_operand.vmem [shape: bf16[32,64], index: 9, kind: input, shape index: {}]   ;;  %s3543_s10 = inlined_call_operand.vmem [shape: f32[1,64], index: 10, kind: input, shape index: {}]   ;;  %s3544_s11 = inlined_call_operand.vmem [shape: bf16[64,32], index: 11, kind: input, shape index: {}]   ;;  %s3545_s12 = inlined_call_operand.vmem [shape: f32[1,32], index: 12, kind: input, shape index: {}]   ;;  %s3546_s13 = inlined_call_operand.vmem [shape: f32[1,32], index: 13, kind: input, shape index: {}]   ;;  %s3547_s14 = inlined_call_operand.vmem [shape: f32[1,32], index: 14, kind: input, shape index: {}]   ;;  %s3548_s15 = inlined_call_operand.hbm [shape: f32[2,8,32], index: 15, kind: output, shape index: {}]  }
   0x1   :  { %3563 = sst [smem:[#allocation27_spill]] %s3538_s5  ;;  %s2695_s20 = scalar_lea.hbm %s3533_s0, 16 }
   0x2   :  { %3564 = sst [smem:[#allocation28_spill]] %s3546_s13  ;;  %p2696_p0 = scmp.ne.s32.totalorder %s3533_s0, %s2695_s20 }
   0x3   :  { %3565 = sst [smem:[#allocation29_spill]] %s3547_s14  ;;  %p2699_p1 = scmp.lt.u32.totalorder %s2695_s20, %s3533_s0 }
   0x4   :  { %3566 = sst [smem:[#allocation30_spill]] %s3548_s15 }
   0x5   :  { %p2701_p2 = pnand %p2699_p1, %p2696_p0 }
   0x7   :  { %2704 = shalt.err (!%p2701_p2)  }
   0x8   :  { %s2879_s25 = smov [#allocation7]  }
   0x9   :  { %21 = dma.hbm_to_smem %s3533_s0, 16, %s2879_s25, [#allocation6] }
   0xa   :  { %2841 = dma.done.wait [#allocation6], 16 }
   0xb   :  { %2842 = vsyncadd [#allocation6], 4294967280 }
   0xc   :  { %23 = sfence }
   0xd   :  { %24 = vsyncpa [#allocation9], 0 }
   0xe   :  { %25 = vsyncpa [#allocation12], 0 }
   0xf   :  { %26 = vsyncpa [#allocation10], 0 }
  0x10   :  { %28 = vsyncpa [#allocation10 + $0x1], 0  ;;  %s2990_s28 = smov 0   ;;  %s2992_s29 = smov 0  }
  0x11   :  { %s2994_s30 = smov 0   ;;  %s2996_s16 = smov 0  }
  0x12   :  { %s2998_s17 = smov 0   ;;  %s3000_s18 = smov 0  }
  0x13 LB: > { %3567 = sst [smem:[#allocation19_spill]] %s2857_s28  ;;  %s2353_s0 = sadd.s32 4294967295, %s2877_s18   ;;  %s2877_s18 = sphi %s3000_s18, %s34_s18   ;;  %s2873_s17 = sphi %s2998_s17, %s3598_s17   ;;  %s2869_s16 = sphi %s2996_s16, %s3601_s16   ;;  %s2865_s30 = sphi %s2994_s30, %s3596_s30   ;;  %s2861_s29 = sphi %s2992_s29, %s3600_s29   ;;  %s2857_s28 = sphi %s2990_s28, %s3599_s28  }
  0x14   : > { %3568 = sst [smem:[#allocation20_spill]] %s2865_s30  ;;  %s2354_s19 = sadd.s32 4294967294, %s2877_s18  }
  0x15   : > { %3569 = sst [smem:[#allocation21_spill]] %s2873_s17  ;;  %s53_s20 = sadd.s32 1, %s2873_s17 }
  0x16   : > { %3570 = sst [smem:[#allocation22_spill]] %s2877_s18  ;;  %s370_s21 = sadd.s32 1, %s2865_s30 }
  0x17   : > { %p55_p3 = scmp.ge.s32.totalorder %s53_s20, 2  ;;  %p380_p4 = scmp.ne.s32.totalorder %s2865_s30, %s2861_s29 }
  0x18   : > { %p381_p5 = scmp.eq.s32.totalorder %s2353_s0, 1  ;;  %p386_p6 = scmp.ne.s32.totalorder %s2861_s29, %s2857_s28 }
  0x19   : > { %s3603_s20 = smov (%p55_p3, %s53_s20), 0  ;;  %p387_p8 = scmp.eq.s32.totalorder %s2354_s19, 1 }
  0x1a   : > { %3571 = sst [smem:[#allocation23_spill]] %s3603_s20  ;;  %p3030_p7 = por %p381_p5, %p380_p4 }
  0x1b   : > { %s365_s23 = ssub.s32 %s2873_s17, %s3603_s20  ;;  %p2355_p9 = scmp.ge.s32.totalorder %s2877_s18, 1 }
  0x1c   : > { %s3572_s22 = scalar_select %p3030_p7, 1, 0 }
  0x1d   : > { %p368_p10 = scmp.eq.s32.totalorder %s365_s23, 0  ;;  %p3037_p11 = por %p387_p8, %p386_p6 }
  0x1e   : > { %3573 = sst [smem:[#allocation24_spill]] %s3572_s22  ;;  %p394_p12 = scmp.lt.s32.totalorder %s2877_s18, 3 }
  0x1f   : > { %s3574_s24 = scalar_select %p3037_p11, 1, 0 }
  0x20   : > { %s3043_s25 = scalar_select %p368_p10, %s2865_s30, %s370_s21  }
  0x21   : > { %3575 = sst [smem:[#allocation25_spill]] %s3574_s24  ;;  %p3045_p13 = pnand %p2355_p9, %p394_p12 }
  0x22   : > { %3576 = sst [smem:[#allocation26_spill]] %s3043_s25  ;;  %p3049_p0 = scmp.eq.s32.totalorder %s2353_s0, 0 }
  0x23   : > { %s3577_s26 = scalar_select %p3045_p13, 1, 0 }
  0x24   : > { %s3578_s27 = scalar_select %p3049_p0, 1, 0 }
  0x25   : > { %p2563_p1 = pneg %p3045_p13  ;;  %s2880_s19 = smov [#allocation11]  }
  0x26   : > { %s422_s23 = sshll.u32 %s2880_s19, 4  ;;  %s2881_s21 = smov [#allocation8]   ;;  %s423_s23 = int_to_ptr.vmem [resolvable:$true] %s422_s23 }
  0x27   : > { %p3057_p2 = pnand %p3049_p0, %p2563_p1  ;;  %s409_s17 = sshll.u32 %s2881_s21, 4  ;;  %s410_s17 = int_to_ptr.vmem [resolvable:$true] %s409_s17 }
  0x28   : > { %s3580_s5 = sld [smem:[#allocation27_spill]] }
  0x29   : > { %p3069_p4 = pneg %p3057_p2 }
  0x2e   : > { %s2705_s0 = scalar_lea.hbm %s3580_s5, 256 }
  0x2f   : > { %p2706_p3 = scmp.ne.s32.totalorder %s3580_s5, %s2705_s0  ;;  %p2712_p8 = scmp.lt.u32.totalorder %s2705_s0, %s3580_s5 }
  0x31   : > { %p2708_p5 = pnand %p3069_p4, %p2706_p3 }
  0x33   : > { %p2709_p6 = pneg %p2708_p5 }
  0x35   : > { %p2714_p9 = pnand %p2712_p8, %p2709_p6 }
  0x37   : > { %2717 = shalt.err (!%p2714_p9)
}
  0x38   : > { %s2718_s30 = scalar_lea.vmem %s423_s23, 256  ;;  %p2726_p11 = scmp.lt.s32.totalorder %s423_s23, %s423_s23 }
  0x39   : > { %p2719_p10 = scmp.ne.s32.totalorder %s423_s23, %s2718_s30  ;;  %p2727_p7 = scmp.lt.s32.totalorder %s2718_s30, %s2718_s30 }
  0x3b   : > { %p2721_p12 = pnand %p2719_p10, %p3069_p4  ;;  %p2728_p0 = por %p2727_p7, %p2726_p11 }
  0x3d   : > { %p2722_p1 = pneg %p2721_p12 }
  0x3f   : > { %p2729_p13 = pnand %p2728_p0, %p2722_p1 }
  0x41   : > { %2732 = shalt.err (!%p2729_p13)
}
  0x42   : > { %s2882_s28 = smov 64   ;;  %s2883_s24 = smov 4  }
  0x43   : > { %2569 = dma.hbm_to_vmem [thread:$0]  (!%p3057_p2), %s3580_s5, 256, %s423_s23, [#allocation12], %s2882_s28, %s2882_s28, %s2883_s24  }
  0x44   : > { %s2733_s0 = scalar_lea.hbm %s3537_s4, 256 }
  0x45   : > { %p2734_p7 = scmp.ne.s32.totalorder %s3537_s4, %s2733_s0  ;;  %p2740_p0 = scmp.lt.u32.totalorder %s2733_s0, %s3537_s4 }
  0x47   : > { %p2736_p11 = pnand %p2734_p7, %p3069_p4 }
  0x49   : > { %p2737_p13 = pneg %p2736_p11 }
  0x4b   : > { %p2742_p3 = pnand %p2740_p0, %p2737_p13 }
  0x4d   : > { %2745 = shalt.err (!%p2742_p3)
}
  0x4e   : > { %s2746_s15 = scalar_lea.vmem %s410_s17, 256  ;;  %p2754_p9 = scmp.lt.s32.totalorder %s410_s17, %s410_s17 }
  0x4f   : > { %p2747_p5 = scmp.ne.s32.totalorder %s410_s17, %s2746_s15  ;;  %p2755_p10 = scmp.lt.s32.totalorder %s2746_s15, %s2746_s15 }
  0x51   : > { %p2749_p6 = pnand %p2747_p5, %p3069_p4  ;;  %p2756_p12 = por %p2755_p10, %p2754_p9 }
  0x53   : > { %p2750_p8 = pneg %p2749_p6 }
  0x55   : > { %p2757_p1 = pnand %p2756_p12, %p2750_p8 }
  0x57   : > { %2760 = shalt.err (!%p2757_p1)
}
  0x58   : > { %2566 = dma.hbm_to_vmem [thread:$0]  (!%p3057_p2), %s3537_s4, 256, %s410_s17, [#allocation9], %s2882_s28, %s2882_s28, %s2883_s24  }
  0x59   : > { %s2884_s22 = smov [#allocation13]   ;;  %s2761_s21 = scalar_lea.hbm %s3539_s6, 256 }
  0x5a   : > { %s435_s23 = sshll.u32 %s2884_s22, 4  ;;  %p2762_p7 = scmp.ne.s32.totalorder %s3539_s6, %s2761_s21  ;;  %s436_s23 = int_to_ptr.vmem [resolvable:$true] %s435_s23 }
  0x5b   : > { %p2768_p0 = scmp.lt.u32.totalorder %s2761_s21, %s3539_s6 }
  0x5c   : > { %p2764_p11 = pnand %p2762_p7, %p3069_p4 }
  0x5e   : > { %p2765_p13 = pneg %p2764_p11 }
  0x60   : > { %p2770_p3 = pnand %p2768_p0, %p2765_p13 }
  0x62   : > { %2773 = shalt.err (!%p2770_p3)
}
  0x63   : > { %s2774_s17 = scalar_lea.vmem %s436_s23, 256  ;;  %p2782_p9 = scmp.lt.s32.totalorder %s436_s23, %s436_s23 }
  0x64   : > { %p2775_p5 = scmp.ne.s32.totalorder %s436_s23, %s2774_s17  ;;  %p2783_p10 = scmp.lt.s32.totalorder %s2774_s17, %s2774_s17 }
  0x66   : > { %p2777_p6 = pnand %p2775_p5, %p3069_p4  ;;  %p2784_p12 = por %p2783_p10, %p2782_p9 }
  0x68   : > { %p2778_p8 = pneg %p2777_p6 }
  0x6a   : > { %p2785_p1 = pnand %p2784_p12, %p2778_p8 }
  0x6c   : > { %2788 = shalt.err (!%p2785_p1)
}
  0x6d   : > { %2572 = dma.hbm_to_vmem [thread:$0]  (!%p3057_p2), %s3539_s6, 256, %s436_s23, [#allocation12], %s2882_s28, %s2882_s28, %s2883_s24  }
  0x6e   : > { %p3582_p7 = scmp.ne.s32.totalorder %s3577_s26, 0 }
  0x6f   : > { %p3583_p4 = scmp.ne.s32.totalorder (!%p3582_p7), %s3578_s27, 0 }
  0x70   : > { %495 = sbr.rel (%p3582_p7) target bundleno = 2443 (0x98b), region = 76 }
  0x77   : > { %2844 = dma.done.wait (%p3583_p4), [#allocation9], 256  }
  0x78   : > { %2846 = vsyncadd (%p3583_p4), [#allocation9], 4294967040 }
  0x79   : > { %2848 = dma.done.wait (%p3583_p4), [#allocation12], 512  }
  0x7a   : > { %2850 = vsyncadd (%p3583_p4), [#allocation12], 4294966784  ;;  %p558_p11 = scmp.lt.s32.totalorder %s2869_s16, 1  ;;  %v2885_v0 = vmov 0.0   ;;  %vm2886_vm0 = vmmov 0   ;;  %v2652_v1 = vld [vmem:[%s3536_s3] sm:$0xff]   ;;  %v655_v21 = vlaneseq }
  0x7b   : > { %2449 = vmatprep.subr.bf16.mxu0 %v2885_v0  ;;  %2457 = vmatprep.subr.bf16.mxu1 %v2885_v0  ;;  %v2653_v2 = vld [vmem:[#allocation8] sm:$0xff]   ;;  %v2654_v3 = vld [vmem:[%s3536_s3 + $0x8] sm:$0xff]   ;;  %v2655_v4 = vld [vmem:[#allocation8 + $0x8] sm:$0xff]   ;;  %vm596_vm1 = vcmask 261120   ;;  %s2887_s0 = smov 104   ;;  %s2888_s30 = smov 120  }
  0x7c   : > { %2453 = vmatprep.mubr.msk.bf16.mxu0 %vm2886_vm0, %v2885_v0  ;;  %s559_s20 = scalar_select %p558_p11, %s2869_s16, 1  ;;  %2461 = vmatprep.mubr.msk.bf16.mxu1 %vm2886_vm0, %v2885_v0  ;;  %v2656_v16 = vld [vmem:[#allocation11] sm:$0xff]   ;;  %v2657_v18 = vld [vmem:[#allocation11 + $0x8] sm:$0xff]   ;;  %vm804_vm2 = vcmask 64512   ;;  %v2890_v19 = vmov 1983009808  }
  0x7d   : > { %2450 = vmatpush3.bf16.msra.mxu0 %v2652_v1  ;;  %2458 = vmatpush3.bf16.msra.mxu1 %v2653_v2  ;;  %s2889_s15 = smov 112   ;;  %805 = vst.msk [vmem:[#allocation5] sm:$0xff] %vm804_vm2, %v2885_v0  ;;  %806 = vst.msk [vmem:[#allocation5 + $0x8] sm:$0xff] %vm804_vm2, %v2885_v0  ;;  %v653_v20 = vunpack.c.l.s4 %v2890_v19  ;;  %v2891_v22 = vmov 1934713408   ;;  %v656_v25 = vshrl.u32 %v655_v21, 7 }
  0x7e   : > { %s2365_s26 = sshll.u32 %s559_s20, 3  ;;  %2451 = vmatprep.subr.bf16.mxu0 %v2885_v0  ;;  %2459 = vmatprep.subr.bf16.mxu1 %v2885_v0  ;;  %807 = vst.msk [vmem:[#allocation5 + $0x10] sm:$0xff] %vm804_vm2, %v2885_v0  ;;  %808 = vst.msk [vmem:[#allocation5 + $0x18] sm:$0xff] %vm804_vm2, %v2885_v0  ;;  %v685_v23 = vunpack.c.l.s4 %v2891_v22  ;;  %vm790_vm3 = vcmask 60416   ;;  %vm795_vm4 = vcmask 7168   ;;  %s573_s17 = sld [smem:[#allocation7 + %s2869_s16]] }
  0x7f   : > { %s3154_s14 = scalar_lea.vmem %s3534_s1, %s2365_s26  ;;  %s571_s18 = scalar_lea.vmem %s3535_s2, %s2365_s26  ;;  %v654_v24 = vunpack.c.0.s8 %v653_v20  ;;  %800 = vst.msk [vmem:[#allocation4] sm:$0xff] %vm795_vm4, %v2885_v0  ;;  %801 = vst.msk [vmem:[#allocation4 + $0x8] sm:$0xff] %vm795_vm4, %v2885_v0  ;;  %vm1555_vm6 = vcmask 1043456   ;;  %vm1937_vm7 = vcmask 130048   ;;  %vm1939_vm8 = vcmask 195584  }
  0x80   : > { %v578_v5 = vld [vmem:[%s3154_s14] sm:$0xff]  ;;  %v686_v28 = vunpack.c.0.s8 %v685_v23  ;;  %802 = vst.msk [vmem:[#allocation4 + $0x10] sm:$0xff] %vm795_vm4, %v2885_v0  ;;  %803 = vst.msk [vmem:[#allocation4 + $0x18] sm:$0xff] %vm795_vm4, %v2885_v0  ;;  %s2894_s5 = smov 16   ;;  %s2895_s13 = smov 8   ;;  %vm2141_vm9 = vcmask 523264  }
  0x81   : > { %v809_v6 = vld [vmem:[%s571_s18] sm:$0xff]  ;;  %v579_v7 = vpack.c.bf16 %v578_v5, %v578_v5  ;;  %2452 = vmatpush3.bf16.msra.mxu0 %v2654_v3  ;;  %2460 = vmatpush3.bf16.msra.mxu1 %v2655_v4  ;;  %v3198_v29 = vsub.s32 %v654_v24, %v656_v25  ;;  %s2896_s20 = smov 24   ;;  %s555_s27 = sand.u32 1, %s2861_s29  }
  0x82   : > { %v810_v8 = vpack.c.bf16 %v809_v6, %v809_v6  ;;  %2465 = vmatprep.subr.bf16.mxu0 %v2885_v0  ;;  %2473 = vmatprep.subr.bf16.mxu1 %v2885_v0  ;;  %v3200_v36 = vsub.s32 %v686_v28, %v656_v25  ;;  %s2364_s28 = sshll.u32 %s555_s27, 3  ;;  %s3586_s24 = sld [smem:[#allocation24_spill]] }
  0x83   : > { %s3587_s23 = sld [smem:[#allocation28_spill]]  ;;  %s3588_s21 = sld [smem:[#allocation29_spill]] }
  0x84   : > { %2454 = vmatmul.mubr.msk.bf16.vlgmr.msra.gmra.mrb[0].mxu0 %vm596_vm1, %v579_v7  ;;  %2462 = vmatmul.mubr.msk.bf16.vlgmr.msra.gmra.mrb[0].mxu1 %vm596_vm1, %v810_v8  ;;  %s2219_s26 = scalar_lea.sflag [#allocation10], %s555_s27 }
  0x85   : > { %2469 = vmatprep.mubr.msk.bf16.mxu0 %vm2886_vm0, %v2885_v0  ;;  %2475 = vmatprep.mubr.msk.bf16.mxu1 %vm2886_vm0, %v2885_v0 }
  0x86   : > { %2466 = vmatpush3.bf16.msra.mxu0 %v2656_v16 }
  0x87   : > { %2467 = vmatprep.subr.bf16.mxu0 %v2885_v0 }
  0x88   : > { %p3590_p13 = scmp.ne.s32.totalorder %s3586_s24, 0 }
  0x8a   : > { %2468 = vmatpush3.bf16.msra.mxu0 %v2657_v18 }
  0x8b   : > { %2479 = vmatprep.subr.bf16.mxu0 %v2885_v0 }
  0x8d   : > { %2470 = vmatmul.mubr.msk.bf16.vlgmr.msra.gmra.mrb[4].mxu0 %vm596_vm1, %v810_v8 }
  0x8e   : > { %2481 = vmatprep.mubr.msk.bf16.mxu0 %vm2886_vm0, %v2885_v0 }
 0x157   : > { %v634_v9 = vpop.f32.mrb[0].mxu0  ;;  %v3173_v10 = vpop.f32.mrb[0].mxu1 }
 0x158   : > { %647 = vrot.lane.b32.xlu1 %v634_v9, %s2887_s0  ;;  %641 = vrot.lane.b32.xlu0 %v634_v9, %s2888_s30  ;;  %v2455_v11 = vpop.f32.mrb[1].mxu0  ;;  %v2463_v13 = vpop.f32.mrb[1].mxu1 }
 0x159   : > { %v637_v12 = vpop.f32.mrb[2].mxu0  ;;  %v868_v15 = vpop.f32.mrb[2].mxu1 }
 0x15a   : > { %v2456_v14 = vpop.f32.mrb[3].mxu0  ;;  %v2464_v17 = vpop.f32.mrb[3].mxu1 }
 0x15c   : > { %928 = vrot.lane.b32.xlu1 %v3173_v10, %s2888_s30  ;;  %644 = vrot.lane.b32.xlu0 %v634_v9, %s2889_s15 }
 0x160   : > { %934 = vrot.lane.b32.xlu1 %v3173_v10, %s2887_s0  ;;  %931 = vrot.lane.b32.xlu0 %v3173_v10, %s2889_s15 }
 0x1ca   : > { %v648_v26 = vpop.permute.xlu1 %647  ;;  %v642_v27 = vpop.permute.xlu0 %641 }
 0x1cb   : > { %v666_v30 = vcombine.low %v642_v27, %v648_v26  ;;  %v667_v31 = vcombine.high %v642_v27, %v648_v26 }
 0x1cd   : > { %v674_v37 = vrot.slane %v666_v30, %v3198_v29  ;;  %v681_v38 = vrot.slane %v667_v31, %v3198_v29 }
 0x1ce   : > { %v929_v32 = vpop.permute.xlu1 %928  ;;  %v645_v33 = vpop.permute.xlu0 %644 }
 0x1cf   : > { %v650_v34 = vcombine.low %v634_v9, %v645_v33  ;;  %v651_v35 = vcombine.high %v634_v9, %v645_v33 }
 0x1d1   : > { %v658_v39 = vrot.slane %v650_v34, %v3198_v29  ;;  %v665_v40 = vrot.slane %v651_v35, %v3198_v29 }
 0x1d2   : > { %v935_v41 = vpop.permute.xlu1 %934  ;;  %v932_v42 = vpop.permute.xlu0 %931 }
 0x1d3   : > { %v682_v43 = vcombine.low %v658_v39, %v674_v37  ;;  %v683_v44 = vcombine.high %v658_v39, %v674_v37  ;;  %v698_v45 = vcombine.low %v665_v40, %v681_v38  ;;  %v699_v46 = vcombine.high %v665_v40, %v681_v38 }
 0x1d4   : > { %v953_v47 = vcombine.low %v929_v32, %v935_v41  ;;  %v954_v48 = vcombine.high %v929_v32, %v935_v41  ;;  %v937_v49 = vcombine.low %v3173_v10, %v932_v42  ;;  %v938_v50 = vcombine.high %v3173_v10, %v932_v42 }
 0x1d5   : > { %v690_v51 = vrot.slane %v682_v43, %v3200_v36  ;;  %v697_v52 = vrot.slane %v683_v44, %v3200_v36  ;;  %v706_v53 = vrot.slane %v698_v45, %v3200_v36  ;;  %v713_v54 = vrot.slane %v699_v46, %v3200_v36 }
 0x1d6   : > { %v961_v55 = vrot.slane %v953_v47, %v3198_v29  ;;  %v968_v56 = vrot.slane %v954_v48, %v3198_v29  ;;  %v945_v57 = vrot.slane %v937_v49, %v3198_v29  ;;  %v952_v58 = vrot.slane %v938_v50, %v3198_v29 }
 0x1d7   : > { %v718_v59 = vcombine.low %v690_v51, %v697_v52  ;;  %v2370_v60 = vcombine.high %v690_v51, %v697_v52  ;;  %v734_v61 = vcombine.low %v706_v53, %v713_v54  ;;  %v2371_v62 = vcombine.high %v706_v53, %v713_v54 }
 0x1d8   : > { %v969_v63 = vcombine.low %v945_v57, %v961_v55  ;;  %v970_v1 = vcombine.high %v945_v57, %v961_v55  ;;  %v985_v2 = vcombine.low %v952_v58, %v968_v56  ;;  %v986_v3 = vcombine.high %v952_v58, %v968_v56 }
 0x1d9   : > { %v725_v4 = vrot.slane %v718_v59, %v3198_v29  ;;  %v733_v5 = vrot.slane %v2370_v60, %v3198_v29  ;;  %v741_v6 = vrot.slane %v734_v61, %v3198_v29  ;;  %v749_v7 = vrot.slane %v2371_v62, %v3198_v29 }
 0x1da   : > { %v977_v8 = vrot.slane %v969_v63, %v3200_v36  ;;  %v984_v9 = vrot.slane %v970_v1, %v3200_v36  ;;  %v993_v10 = vrot.slane %v985_v2, %v3200_v36  ;;  %v1000_v11 = vrot.slane %v986_v3, %v3200_v36  ;;  %v3260_v63 = vpop.f32.mrb[4].mxu0 }
 0x1db   : > { %v750_v12 = vcombine.low %v725_v4, %v733_v5  ;;  %v751_v13 = vcombine.high %v725_v4, %v733_v5  ;;  %v766_v14 = vcombine.low %v741_v6, %v749_v7  ;;  %v767_v15 = vcombine.high %v741_v6, %v749_v7  ;;  %v2471_v1 = vpop.f32.mrb[5].mxu0 }
 0x1dc   : > { %v1005_v16 = vcombine.low %v977_v8, %v984_v9  ;;  %v2378_v17 = vcombine.high %v977_v8, %v984_v9  ;;  %v1021_v18 = vcombine.low %v993_v10, %v1000_v11  ;;  %v2379_v19 = vcombine.high %v993_v10, %v1000_v11  ;;  %v924_v2 = vpop.f32.mrb[6].mxu0 }
 0x1dd   : > { %v758_v20 = vrot.slane %v750_v12, %v3200_v36  ;;  %v765_v22 = vrot.slane %v751_v13, %v3200_v36  ;;  %v774_v23 = vrot.slane %v766_v14, %v3200_v36  ;;  %v781_v24 = vrot.slane %v767_v15, %v3200_v36  ;;  %v2472_v3 = vpop.f32.mrb[7].mxu0 }
 0x1de   : > { %v1012_v25 = vrot.slane %v1005_v16, %v3198_v29  ;;  %v1020_v26 = vrot.slane %v2378_v17, %v3198_v29  ;;  %v1028_v27 = vrot.slane %v1021_v18, %v3198_v29  ;;  %v1036_v28 = vrot.slane %v2379_v19, %v3198_v29 }
 0x1df   : > { %v782_v30 = vcombine.low %v758_v20, %v774_v23  ;;  %v783_v31 = vcombine.high %v758_v20, %v774_v23  ;;  %v784_v32 = vcombine.low %v765_v22, %v781_v24  ;;  %v785_v33 = vcombine.high %v765_v22, %v781_v24 }
 0x1e0   : > { %v1037_v34 = vcombine.low %v1012_v25, %v1020_v26  ;;  %v1053_v35 = vcombine.low %v1028_v27, %v1036_v28  ;;  %v1038_v37 = vcombine.high %v1012_v25, %v1020_v26  ;;  %v1054_v38 = vcombine.high %v1028_v27, %v1036_v28 }
 0x1e1   : > { %v786_v39 = vpack.c.bf16 %v782_v30, %v782_v30  ;;  %v787_v40 = vpack.c.bf16 %v783_v31, %v783_v31  ;;  %v788_v41 = vpack.c.bf16 %v784_v32, %v784_v32  ;;  %v789_v42 = vpack.c.bf16 %v785_v33, %v785_v33 }
 0x1e2   : > { %v1045_v43 = vrot.slane %v1037_v34, %v3200_v36  ;;  %v1061_v44 = vrot.slane %v1053_v35, %v3200_v36  ;;  %v1052_v47 = vrot.slane %v1038_v37, %v3200_v36  ;;  %v1068_v48 = vrot.slane %v1054_v38, %v3200_v36 }
 0x1e3   : > { %791 = vst.msk [vmem:[#allocation2] sm:$0xf] %vm790_vm3, %v786_v39  ;;  %792 = vst.msk [vmem:[#allocation2 + $0x4] sm:$0xf] %vm790_vm3, %v787_v40  ;;  %v2892_v4 = vmov -1e+30   ;;  %v1421_v6 = vstv %s573_s17 }
 0x1e4   : > { %793 = vst.msk [vmem:[#allocation2 + $0x8] sm:$0xf] %vm790_vm3, %v788_v41  ;;  %794 = vst.msk [vmem:[#allocation2 + $0xc] sm:$0xf] %vm790_vm3, %v789_v42  ;;  %v1069_v45 = vcombine.low %v1045_v43, %v1061_v44  ;;  %v1070_v46 = vcombine.high %v1045_v43, %v1061_v44  ;;  %v1071_v53 = vcombine.low %v1052_v47, %v1068_v48  ;;  %v1418_v5 = vand.u32 127, %v655_v21 }
 0x1e5   : > { %v1072_v54 = vcombine.high %v1052_v47, %v1068_v48  ;;  %797 = vst.msk [vmem:[#allocation3 + $0x8] sm:$0xff] %vm795_vm4, %v2892_v4  ;;  %796 = vst.msk [vmem:[#allocation3] sm:$0xff] %vm795_vm4, %v2892_v4  ;;  %v2893_v33 = vmov 0  }
 0x1e6   : > { %v1073_v49 = vpack.c.bf16 %v1069_v45, %v1069_v45  ;;  %v1074_v50 = vpack.c.bf16 %v1070_v46, %v1070_v46  ;;  %v1075_v55 = vpack.c.bf16 %v1071_v53, %v1071_v53  ;;  %798 = vst.msk [vmem:[#allocation3 + $0x10] sm:$0xff] %vm795_vm4, %v2892_v4  ;;  %799 = vst.msk [vmem:[#allocation3 + $0x18] sm:$0xff] %vm795_vm4, %v2892_v4  ;;  %2651 = vset.pattern.permute.xlu0 %v2893_v33 }
 0x1e7   : > { %v1076_v56 = vpack.c.bf16 %v1072_v54, %v1072_v54  ;;  %vm3276_vm5 = vcmp.lt.s32.totalorder %v1418_v5, %v1421_v6  ;;  %2650 = vset.pattern.permute.xlu1 %v2893_v33 }
 0x1e8   : > { %v1236_v51 = vsel %vm804_vm2, %v1073_v49, 0  ;;  %v1282_v52 = vsel %vm804_vm2, %v1074_v50, 0  ;;  %v1328_v59 = vsel %vm804_vm2, %v1075_v55, 0 }
 0x1e9   : > { %2474 = vmatpush3.bf16.xpose.msra.mxu1 %v1236_v51  ;;  %2480 = vmatpush3.bf16.xpose.msra.mxu0 %v1282_v52  ;;  %v1374_v60 = vsel %vm804_vm2, %v1076_v56, 0 }
 0x1ea   : > { %2485 = vmatprep.subr.bf16.mxu1 %v2885_v0  ;;  %2491 = vmatprep.subr.bf16.mxu0 %v2885_v0  ;;  %v1227_v57 = vld [vmem:[#allocation2] sm:$0xf]  ;;  %v1228_v58 = vld [vmem:[#allocation2 + $0x4] sm:$0xf] }
 0x1eb   : > { %v1229_v61 = vld [vmem:[#allocation2 + $0x8] sm:$0xf]  ;;  %v1230_v62 = vld [vmem:[#allocation2 + $0xc] sm:$0xf] }
 0x1ec   : > { %v3310_v34 = vld [vmem:[#allocation3 + $0x8] sm:$0xff]  ;;  %v3312_v35 = vld [vmem:[#allocation3] sm:$0xff] }
 0x1ed   : > { %v3330_v44 = vld [vmem:[#allocation3 + $0x10] sm:$0xff]  ;;  %v3335_v47 = vld [vmem:[#allocation3 + $0x18] sm:$0xff] }
 0x1f0   : > { %2476 = vmatmul.mubr.msk.bf16.vlgmr.msra.gmra.mrb[4].mxu1 %vm804_vm2, %v1227_v57  ;;  %2482 = vmatmul.mubr.msk.bf16.vlgmr.msra.gmra.mrb[8].mxu0 %vm804_vm2, %v1228_v58 }
 0x1f1   : > { %2486 = vmatpush3.bf16.xpose.msra.mxu1 %v1328_v59  ;;  %2492 = vmatpush3.bf16.xpose.msra.mxu0 %v1374_v60 }
 0x1f2   : > { %2487 = vmatprep.mubr.msk.bf16.mxu1 %vm2886_vm0, %v2885_v0  ;;  %2493 = vmatprep.mubr.msk.bf16.mxu0 %vm2886_vm0, %v2885_v0 }
 0x1f3   : > { %2497 = vmatprep.subr.bf16.mxu1 %v2885_v0  ;;  %2503 = vmatprep.subr.bf16.mxu0 %v2885_v0 }
 0x1f8   : > { %2488 = vmatmul.mubr.msk.bf16.vlgmr.msra.gmra.mrb[8].mxu1 %vm804_vm2, %v1229_v61  ;;  %2494 = vmatmul.mubr.msk.bf16.vlgmr.msra.gmra.mrb[12].mxu0 %vm804_vm2, %v1230_v62 }
 0x1f9   : > { %2499 = vmatprep.mubr.msk.bf16.mxu1 %vm2886_vm0, %v2885_v0  ;;  %2505 = vmatprep.mubr.msk.bf16.mxu0 %vm2886_vm0, %v2885_v0 }
 0x2c3   : > { %v1272_v8 = vpop.f32.mrb[4].mxu1  ;;  %v1318_v9 = vpop.f32.mrb[8].mxu0 }
 0x2c4   : > { %v3282_v10 = vsel %vm3276_vm5, %v1272_v8, -1e+09  ;;  %v3286_v11 = vsel %vm3276_vm5, %v1318_v9, -1e+09  ;;  %v2477_v12 = vpop.f32.mrb[5].mxu1  ;;  %v2483_v13 = vpop.f32.mrb[9].mxu0 }
 0x2c5   : > { %v1275_v14 = vpop.f32.mrb[6].mxu1  ;;  %v1321_v15 = vpop.f32.mrb[10].mxu0  ;;  %v1434_v21 = vsel %vm804_vm2, %v3286_v11, -inf  ;;  %v1431_v16 = vsel %vm804_vm2, %v3282_v10, -inf }
 0x2c6   : > { %v2478_v17 = vpop.f32.mrb[7].mxu1  ;;  %v2484_v18 = vpop.f32.mrb[11].mxu0  ;;  %1435 = vmax.xlane.f32.xlu1 %v1434_v21  ;;  %1432 = vmax.xlane.f32.xlu0 %v1431_v16 }
 0x2cb   : > { %v1364_v19 = vpop.f32.mrb[8].mxu1  ;;  %v1410_v20 = vpop.f32.mrb[12].mxu0 }
 0x2cc   : > { %v3294_v22 = vsel %vm3276_vm5, %v1364_v19, -1e+09  ;;  %v2489_v23 = vpop.f32.mrb[9].mxu1  ;;  %v2495_v24 = vpop.f32.mrb[13].mxu0  ;;  %v3300_v28 = vsel %vm3276_vm5, %v1410_v20, -1e+09 }
 0x2cd   : > { %v1367_v25 = vpop.f32.mrb[10].mxu1  ;;  %v1413_v26 = vpop.f32.mrb[14].mxu0  ;;  %v1437_v27 = vsel %vm804_vm2, %v3294_v22, -inf  ;;  %v1440_v32 = vsel %vm804_vm2, %v3300_v28, -inf }
 0x2ce   : > { %v2490_v30 = vpop.f32.mrb[11].mxu1  ;;  %v2496_v31 = vpop.f32.mrb[15].mxu0  ;;  %1438 = vmax.xlane.f32.xlu0 %v1437_v27 }
 0x2d2   : > { %1441 = vmax.xlane.f32.xlu0 %v1440_v32 }
 0x2d7   : > { %1078 = vrot.lane.b32.xlu1 %v3260_v63, %s2888_s30  ;;  %s557_s30 = scalar_lea.vmem [#allocation14], %s2364_s28 }
 0x2db   : > { %1084 = vrot.lane.b32.xlu1 %v3260_v63, %s2887_s0  ;;  %s2410_s0 = sshll.u32 %s2869_s16, 7  ;;  %s2897_s16 = smov [#allocation14]  }
 0x2dc   : > { %s2793_s28 = sshll.u32 %s2897_s16, 4  ;;  %s2794_s28 = int_to_ptr.vmem [resolvable:$false] %s2793_s28 }
 0x2e8   : > { %1081 = vrot.lane.b32.xlu0 %v3260_v63, %s2889_s15  ;;  %s2233_s15 = sshll.u32 %s557_s30, 4  ;;  %s3487_s15 = int_to_ptr.vmem [resolvable:$true] %s2233_s15 }
 0x2e9   : > { %s2789_s19 = scalar_lea.vmem %s3487_s15, 128  ;;  %p2796_p5 = scmp.lt.s32.totalorder %s3487_s15, %s2794_s28 }
 0x2ea   : > { %p2790_p2 = scmp.ne.s32.totalorder %s3487_s15, %s2789_s19 }
 0x2ec   : > { %p2791_p0 = pnand %p2790_p2, %p3590_p13 }
 0x2ee   : > { %p2792_p3 = pneg %p2791_p0 }
 0x353   : > { %v1436_v37 = vpop.xlane.xlu1 %1435  ;;  %v1433_v38 = vpop.xlane.xlu0 %1432 }
 0x354   : > { %v3315_v39 = vmax.f32 %v3310_v34, %v1436_v37  ;;  %v3318_v40 = vmax.f32 %v3312_v35, %v1433_v38 }
 0x356   : > { %v1448_v41 = vsub.f32 %v3310_v34, %v3315_v39  ;;  %1746 = vst.msk [vmem:[#allocation3 + $0x8] sm:$0xff] %vm795_vm4, %v3315_v39  ;;  %v1447_v42 = vsub.f32 %v3312_v35, %v3318_v40  ;;  %1745 = vst.msk [vmem:[#allocation3] sm:$0xff] %vm795_vm4, %v3318_v40  ;;  %1466 = vperm.xlu0 %2651, %v3315_v39   ;;  %1461 = vperm.xlu1 %2650, %v3318_v40   ;;  %v1493_v34 = vld [vmem:[#allocation4 + $0x10] sm:$0xff] }
 0x357   : > { %v1079_v43 = vpop.permute.xlu1 %1078 }
 0x35b   : > { %v1439_v45 = vpop.xlane.xlu0 %1438  ;;  %v1085_v49 = vpop.permute.xlu1 %1084 }
 0x35c   : > { %v3333_v46 = vmax.f32 %v3330_v44, %v1439_v45  ;;  %v1103_v52 = vcombine.low %v1079_v43, %v1085_v49  ;;  %v1104_v53 = vcombine.high %v1079_v43, %v1085_v49 }
 0x35e   : > { %v1449_v48 = vsub.f32 %v3330_v44, %v3333_v46  ;;  %1747 = vst.msk [vmem:[#allocation3 + $0x10] sm:$0xff] %vm795_vm4, %v3333_v46  ;;  %1471 = vperm.xlu1 %2650, %v3333_v46   ;;  %v1111_v58 = vrot.slane %v1103_v52, %v3198_v29  ;;  %v1118_v59 = vrot.slane %v1104_v53, %v3198_v29  ;;  %v1453_v46 = vmul.f32 1.442695, %v1448_v41 }
 0x35f   : > { %v1442_v50 = vpop.xlane.xlu0 %1441 }
 0x360   : > { %v3343_v51 = vmax.f32 %v3335_v47, %v1442_v50 }
 0x362   : > { %v1450_v54 = vsub.f32 %v3335_v47, %v3343_v51  ;;  %1748 = vst.msk [vmem:[#allocation3 + $0x18] sm:$0xff] %vm795_vm4, %v3343_v51  ;;  %1476 = vperm.xlu1 %2650, %v3343_v51  }
 0x363   : > { %v1082_v55 = vpop.permute.xlu0 %1081 }
 0x364   : > { %v1087_v56 = vcombine.low %v3260_v63, %v1082_v55  ;;  %v1088_v57 = vcombine.high %v3260_v63, %v1082_v55 }
 0x366   : > { %v1095_v60 = vrot.slane %v1087_v56, %v3198_v29  ;;  %v1102_v61 = vrot.slane %v1088_v57, %v3198_v29 }
 0x368   : > { %v1119_v62 = vcombine.low %v1095_v60, %v1111_v58  ;;  %v1120_v1 = vcombine.high %v1095_v60, %v1111_v58  ;;  %v1135_v2 = vcombine.low %v1102_v61, %v1118_v59  ;;  %v1136_v3 = vcombine.high %v1102_v61, %v1118_v59 }
 0x36a   : > { %v1127_v4 = vrot.slane %v1119_v62, %v3200_v36  ;;  %v1134_v5 = vrot.slane %v1120_v1, %v3200_v36  ;;  %v1143_v6 = vrot.slane %v1135_v2, %v3200_v36  ;;  %v1150_v63 = vrot.slane %v1136_v3, %v3200_v36 }
 0x36c   : > { %v1155_v7 = vcombine.low %v1127_v4, %v1134_v5  ;;  %v2380_v8 = vcombine.high %v1127_v4, %v1134_v5  ;;  %v1171_v9 = vcombine.low %v1143_v6, %v1150_v63  ;;  %v2381_v12 = vcombine.high %v1143_v6, %v1150_v63 }
 0x36d   : > { %v1455_v63 = vmul.f32 1.442695, %v1449_v48 }
 0x36e   : > { %v1162_v13 = vrot.slane %v1155_v7, %v3198_v29  ;;  %v1170_v14 = vrot.slane %v2380_v8, %v3198_v29  ;;  %v1178_v15 = vrot.slane %v1171_v9, %v3198_v29  ;;  %v1186_v21 = vrot.slane %v2381_v12, %v3198_v29  ;;  %v1492_v12 = vld [vmem:[#allocation4 + $0x8] sm:$0xff] }
 0x36f   : > { %v1457_v7 = vmul.f32 1.442695, %v1450_v54  ;;  %v1491_v54 = vld [vmem:[#allocation4] sm:$0xff] }
 0x370   : > { %v1187_v16 = vcombine.low %v1162_v13, %v1170_v14  ;;  %v1203_v17 = vcombine.low %v1178_v15, %v1186_v21  ;;  %v1188_v18 = vcombine.high %v1162_v13, %v1170_v14  ;;  %v1204_v19 = vcombine.high %v1178_v15, %v1186_v21 }
 0x372   : > { %v1195_v20 = vrot.slane %v1187_v16, %v3200_v36  ;;  %v1211_v23 = vrot.slane %v1203_v17, %v3200_v36  ;;  %v1202_v24 = vrot.slane %v1188_v18, %v3200_v36  ;;  %v1218_v25 = vrot.slane %v1204_v19, %v3200_v36  ;;  %v1494_v18 = vld [vmem:[#allocation4 + $0x18] sm:$0xff] }
 0x374   : > { %v1219_v26 = vcombine.low %v1195_v20, %v1211_v23  ;;  %v1220_v27 = vcombine.high %v1195_v20, %v1211_v23  ;;  %v1221_v30 = vcombine.low %v1202_v24, %v1218_v25  ;;  %v1222_v31 = vcombine.high %v1202_v24, %v1218_v25 }
 0x376   : > { %v1223_v32 = vpack.c.bf16 %v1219_v26, %v1219_v26  ;;  %v1224_v33 = vpack.c.bf16 %v1220_v27, %v1220_v27  ;;  %v1225_v37 = vpack.c.bf16 %v1221_v30, %v1221_v30  ;;  %v1226_v38 = vpack.c.bf16 %v1222_v31, %v1222_v31 }
 0x378   : > { %v1557_v43 = vsel %vm1555_vm6, %v1223_v32, 0  ;;  %v1603_v45 = vsel %vm1555_vm6, %v1224_v33, 0  ;;  %v1649_v49 = vsel %vm1555_vm6, %v1225_v37, 0  ;;  %v1695_v50 = vsel %vm1555_vm6, %v1226_v38, 0 }
 0x379   : > { %2498 = vmatpush3.bf16.msra.mxu1 %v1557_v43  ;;  %2504 = vmatpush3.bf16.msra.mxu0 %v1603_v45  ;;  %v1520_v43 = vld [vmem:[#allocation5] sm:$0xff]  ;;  %v1521_v45 = vld [vmem:[#allocation5 + $0x8] sm:$0xff] }
 0x37a   : > { %2509 = vmatprep.subr.bf16.mxu1 %v2885_v0  ;;  %2515 = vmatprep.subr.bf16.mxu0 %v2885_v0 }
 0x3d5   : > { %v1462_v52 = vpop.permute.xlu1 %1461  ;;  %v1467_v53 = vpop.permute.xlu0 %1466 }
 0x3d6   : > { %v1479_v55 = vsub.f32 %v3282_v10, %v1462_v52  ;;  %v1480_v56 = vsub.f32 %v3286_v11, %v1467_v53 }
 0x3d8   : > { %v1483_v57 = vmul.f32 1.442695, %v1479_v55  ;;  %v1485_v58 = vmul.f32 1.442695, %v1480_v56 }
 0x3da   : > { %2666 = vpow2.f32 %v1483_v57 }
 0x3db   : > { %2668 = vpow2.f32 %v1485_v58 }
 0x3dd   : > { %v1472_v59 = vpop.permute.xlu1 %1471 }
 0x3de   : > { %v1481_v60 = vsub.f32 %v3294_v22, %v1472_v59  ;;  %v1451_v22 = vmul.f32 1.442695, %v1447_v42 }
 0x3e0   : > { %v1487_v61 = vmul.f32 1.442695, %v1481_v60 }
 0x3e1   : > { %v1477_v62 = vpop.permute.xlu1 %1476 }
 0x3e2   : > { %2670 = vpow2.f32 %v1487_v61  ;;  %v1482_v1 = vsub.f32 %v3300_v28, %v1477_v62 }
 0x3e4   : > { %v2667_v2 = vpop.eup %2666  ;;  %v1489_v3 = vmul.f32 1.442695, %v1482_v1 }
 0x3e5   : > { %v2669_v4 = vpop.eup %2668  ;;  %v1499_v5 = vsel %vm804_vm2, %v2667_v2, 0.0  ;;  %v1548_v10 = vpack.c.bf16 %v2667_v2, %v2667_v2  ;;  %v1522_v2 = vld [vmem:[#allocation5 + $0x10] sm:$0xff] }
 0x3e6   : > { %2672 = vpow2.f32 %v1489_v3  ;;  %1500 = vadd.xlane.f32.xlu0 %v1499_v5  ;;  %v1502_v11 = vsel %vm804_vm2, %v2669_v4, 0.0  ;;  %v1549_v6 = vpack.c.bf16 %v2669_v4, %v2669_v4  ;;  %v1523_v5 = vld [vmem:[#allocation5 + $0x18] sm:$0xff] }
 0x3e7   : > { %1503 = vadd.xlane.f32.xlu1 %v1502_v11  ;;  %2500 = vmatmul.mubr.msk.bf16.vlgmr.msra.gmra.mrb[12].mxu1 %vm804_vm2, %v1548_v10  ;;  %2674 = vpow2.f32 %v1451_v22 }
 0x3e8   : > { %2506 = vmatmul.mubr.msk.bf16.vlgmr.msra.gmra.mrb[16].mxu0 %vm804_vm2, %v1549_v6  ;;  %2510 = vmatpush3.bf16.msra.mxu1 %v1649_v49  ;;  %2676 = vpow2.f32 %v1455_v63 }
 0x3e9   : > { %2516 = vmatpush3.bf16.msra.mxu0 %v1695_v50  ;;  %2511 = vmatprep.mubr.msk.bf16.mxu1 %vm2886_vm0, %v2885_v0  ;;  %2678 = vpow2.f32 %v1457_v7 }
 0x3ea   : > { %2517 = vmatprep.mubr.msk.bf16.mxu0 %vm2886_vm0, %v2885_v0  ;;  %2521 = vmatprep.subr.bf16.mxu1 %v2885_v0  ;;  %2680 = vpow2.f32 %v1453_v46 }
 0x3eb   : > { %2529 = vmatprep.subr.bf16.mxu0 %v2885_v0 }
 0x3ec   : > { %v2671_v28 = vpop.eup %2670 }
 0x3ed   : > { %v1505_v35 = vsel %vm804_vm2, %v2671_v28, 0.0  ;;  %v1550_v40 = vpack.c.bf16 %v2671_v28, %v2671_v28 }
 0x3ee   : > { %1506 = vadd.xlane.f32.xlu0 %v1505_v35 }
 0x3ef   : > { %2512 = vmatmul.mubr.msk.bf16.vlgmr.msra.gmra.mrb[16].mxu1 %vm804_vm2, %v1550_v40 }
 0x3f0   : > { %v2673_v42 = vpop.eup %2672  ;;  %2525 = vmatprep.mubr.msk.bf16.mxu1 %vm2886_vm0, %v2885_v0 }
 0x3f1   : > { %v1508_v8 = vsel %vm804_vm2, %v2673_v42, 0.0  ;;  %v1551_v9 = vpack.c.bf16 %v2673_v42, %v2673_v42  ;;  %v2675_v44 = vpop.eup %2674 }
 0x3f2   : > { %1509 = vadd.xlane.f32.xlu0 %v1508_v8  ;;  %v2677_v48 = vpop.eup %2676  ;;  %v1495_v13 = vmul.f32 %v2675_v44, %v1491_v54 }
 0x3f3   : > { %2518 = vmatmul.mubr.msk.bf16.vlgmr.msra.gmra.mrb[20].mxu0 %vm804_vm2, %v1551_v9  ;;  %v2679_v47 = vpop.eup %2678  ;;  %v1497_v39 = vmul.f32 %v2677_v48, %v1493_v34 }
 0x3f4   : > { %2533 = vmatprep.mubr.msk.bf16.mxu0 %vm2886_vm0, %v2885_v0  ;;  %v2681_v51 = vpop.eup %2680  ;;  %v1498_v23 = vmul.f32 %v2679_v47, %v1494_v18 }
 0x3f5   : > { %v1496_v14 = vmul.f32 %v2681_v51, %v1492_v12 }
 0x3f8   : > { %1526 = vperm.xlu1 %2650, %v2675_v44  }
 0x3fc   : > { %1536 = vperm.xlu1 %2650, %v2677_v48  }
 0x400   : > { %1541 = vperm.xlu1 %2650, %v2679_v47  }
 0x408   : > { %1531 = vperm.xlu0 %2651, %v2681_v51  }
 0x473   : > { %v1501_v15 = vpop.xlane.xlu0 %1500 }
 0x474   : > { %v1504_v21 = vpop.xlane.xlu1 %1503  ;;  %v1511_v16 = vadd.f32 %v1501_v15, %v1495_v13 }
 0x475   : > { %v1512_v17 = vadd.f32 %v1504_v21, %v1496_v14 }
 0x476   : > { %1516 = vst.msk [vmem:[#allocation4] sm:$0xff] %vm795_vm4, %v1511_v16 }
 0x477   : > { %1517 = vst.msk [vmem:[#allocation4 + $0x8] sm:$0xff] %vm795_vm4, %v1512_v17 }
 0x478   : > { %v1527_v38 = vpop.permute.xlu1 %1526 }
 0x479   : > { %v1544_v50 = vmul.f32 %v1527_v38, %v1520_v43 }
 0x47b   : > { %v1507_v41 = vpop.xlane.xlu0 %1506 }
 0x47c   : > { %v1513_v19 = vadd.f32 %v1507_v41, %v1497_v39  ;;  %v1537_v52 = vpop.permute.xlu1 %1536 }
 0x47d   : > { %v1752_v20 = vld [vmem:[#allocation4] sm:$0xff]  ;;  %v1546_v4 = vmul.f32 %v1537_v52, %v1522_v2 }
 0x47e   : > { %1518 = vst.msk [vmem:[#allocation4 + $0x10] sm:$0xff] %vm795_vm4, %v1513_v19  ;;  %v1753_v24 = vld [vmem:[#allocation4 + $0x8] sm:$0xff]  ;;  %2682 = vrcp.f32 %v1752_v20 }
 0x47f   : > { %v1510_v25 = vpop.xlane.xlu0 %1509  ;;  %2684 = vrcp.f32 %v1753_v24 }
 0x480   : > { %v1514_v26 = vadd.f32 %v1510_v25, %v1498_v23  ;;  %v1542_v10 = vpop.permute.xlu1 %1541 }
 0x481   : > { %v1547_v63 = vmul.f32 %v1542_v10, %v1523_v5 }
 0x482   : > { %1519 = vst.msk [vmem:[#allocation4 + $0x18] sm:$0xff] %vm795_vm4, %v1514_v26 }
 0x485   : > { %v1754_v27 = vld [vmem:[#allocation4 + $0x10] sm:$0xff] }
 0x486   : > { %2686 = vrcp.f32 %v1754_v27 }
 0x487   : > { %v1532_v49 = vpop.permute.xlu0 %1531 }
 0x488   : > { %v2683_v30 = vpop.eup %2682  ;;  %v1545_v53 = vmul.f32 %v1532_v49, %v1521_v45 }
 0x489   : > { %v2685_v31 = vpop.eup %2684  ;;  %1766 = vperm.xlu0 %2651, %v2683_v30   ;;  %v1755_v32 = vld [vmem:[#allocation4 + $0x18] sm:$0xff]  ;;  %v2658_v30 = vld [vmem:[#allocation13] sm:$0xff]  }
 0x48a   : > { %1771 = vperm.xlu1 %2650, %v2685_v31   ;;  %2688 = vrcp.f32 %v1755_v32  ;;  %2522 = vmatpush3.bf16.msra.mxu1 %v2658_v30  ;;  %v2397_v30 = vld [vmem:[%s3543_s10] ss:$0 sm:$0xff] }
 0x48b   : > { %2523 = vmatprep.subr.bf16.mxu1 %v2885_v0 }
 0x490   : > { %v2687_v33 = vpop.eup %2686 }
 0x491   : > { %1776 = vperm.xlu0 %2651, %v2687_v33  }
 0x494   : > { %v2689_v37 = vpop.eup %2688 }
 0x495   : > { %1781 = vperm.xlu1 %2650, %v2689_v37  }
 0x4ba   : > { %v1593_v55 = vpop.f32.mrb[12].mxu1 }
 0x4bb   : > { %v1737_v56 = vadd.f32 %v1593_v55, %v1544_v50  ;;  %v1639_v57 = vpop.f32.mrb[16].mxu0  ;;  %v2501_v58 = vpop.f32.mrb[13].mxu1  ;;  %v2659_v50 = vld [vmem:[#allocation13 + $0x8] sm:$0xff]  }
 0x4bc   : > { %v1738_v59 = vadd.f32 %v1639_v57, %v1545_v53  ;;  %v2507_v60 = vpop.f32.mrb[17].mxu0  ;;  %v1596_v61 = vpop.f32.mrb[14].mxu1  ;;  %2524 = vmatpush3.bf16.msra.mxu1 %v2659_v50 }
 0x4bd   : > { %1741 = vst.msk [vmem:[#allocation5] sm:$0xff] %vm804_vm2, %v1737_v56  ;;  %v1642_v62 = vpop.f32.mrb[18].mxu0  ;;  %v2502_v1 = vpop.f32.mrb[15].mxu1  ;;  %2537 = vmatprep.subr.bf16.mxu1 %v2885_v0 }
 0x4be   : > { %1742 = vst.msk [vmem:[#allocation5 + $0x8] sm:$0xff] %vm804_vm2, %v1738_v59  ;;  %v2508_v3 = vpop.f32.mrb[19].mxu0 }
 0x4c2   : > { %v1685_v11 = vpop.f32.mrb[16].mxu1 }
 0x4c3   : > { %v1739_v6 = vadd.f32 %v1685_v11, %v1546_v4  ;;  %v2513_v22 = vpop.f32.mrb[17].mxu1 }
 0x4c4   : > { %v1688_v28 = vpop.f32.mrb[18].mxu1  ;;  %v1760_v54 = vld [vmem:[#allocation5] sm:$0xff] }
 0x4c5   : > { %1743 = vst.msk [vmem:[#allocation5 + $0x10] sm:$0xff] %vm804_vm2, %v1739_v6  ;;  %v2514_v35 = vpop.f32.mrb[19].mxu1  ;;  %v1761_v13 = vld [vmem:[#allocation5 + $0x8] sm:$0xff] }
 0x4c6   : > { %v1731_v40 = vpop.f32.mrb[20].mxu0 }
 0x4c7   : > { %v1740_v42 = vadd.f32 %v1731_v40, %v1547_v63  ;;  %v2519_v7 = vpop.f32.mrb[21].mxu0  ;;  %v2694_v40 = vld [vmem:[%s3154_s14] sm:$0xff]  ;;  %s2795_s14 = scalar_lea.vmem %s2794_s28, 256 }
 0x4c8   : > { %v1734_v8 = vpop.f32.mrb[22].mxu0  ;;  %p2797_p6 = scmp.lt.s32.totalorder %s2795_s14, %s2789_s19 }
 0x4c9   : > { %1744 = vst.msk [vmem:[#allocation5 + $0x18] sm:$0xff] %vm804_vm2, %v1740_v42  ;;  %v2520_v9 = vpop.f32.mrb[23].mxu0 }
 0x4ca   : > { %p2798_p8 = por %p2797_p6, %p2796_p5 }
 0x4cc   : > { %v1762_v48 = vld [vmem:[#allocation5 + $0x10] sm:$0xff]  ;;  %p2799_p9 = pnand %p2798_p8, %p2792_p3 }
 0x4d0   : > { %v1763_v14 = vld [vmem:[#allocation5 + $0x18] sm:$0xff] }
 0x508   : > { %v1767_v44 = vpop.permute.xlu0 %1766 }
 0x509   : > { %v1772_v46 = vpop.permute.xlu1 %1771  ;;  %v1784_v12 = vmul.f32 %v1767_v44, %v1760_v54  ;;  %v2662_v54 = vld [vmem:[%s3544_s11] sm:$0xff]  }
 0x50a   : > { %v1785_v21 = vmul.f32 %v1772_v46, %v1761_v13 }
 0x510   : > { %v1777_v47 = vpop.permute.xlu0 %1776 }
 0x511   : > { %v1786_v51 = vmul.f32 %v1777_v47, %v1762_v48  ;;  %v2660_v47 = vld [vmem:[%s3542_s9] sm:$0xff]  }
 0x512   : > { %2530 = vmatpush3.bf16.msra.mxu0 %v2660_v47 }
 0x513   : > { %v1788_v16 = vcombine.low %v1784_v12, %v1786_v51  ;;  %v1789_v17 = vcombine.high %v1784_v12, %v1786_v51  ;;  %v2661_v51 = vld [vmem:[%s3542_s9 + $0x8] sm:$0xff]   ;;  %2531 = vmatprep.subr.bf16.mxu0 %v2885_v0 }
 0x514   : > { %v1782_v15 = vpop.permute.xlu1 %1781  ;;  %v2663_v12 = vld [vmem:[%s3544_s11 + $0x8] sm:$0xff]  }
 0x515   : > { %v1787_v34 = vmul.f32 %v1782_v15, %v1763_v14  ;;  %v1796_v18 = vrot.slane %v1788_v16, %v3198_v29  ;;  %v1803_v19 = vrot.slane %v1789_v17, %v3198_v29 }
 0x516   : > { %2532 = vmatpush3.bf16.msra.mxu0 %v2661_v51 }
 0x517   : > { %v1804_v39 = vcombine.low %v1785_v21, %v1787_v34  ;;  %v1805_v41 = vcombine.high %v1785_v21, %v1787_v34 }
 0x519   : > { %v1812_v20 = vrot.slane %v1804_v39, %v3198_v29  ;;  %v1819_v23 = vrot.slane %v1805_v41, %v3198_v29 }
 0x51b   : > { %v1820_v24 = vcombine.low %v1796_v18, %v1812_v20  ;;  %v1821_v25 = vcombine.high %v1796_v18, %v1812_v20  ;;  %v1836_v26 = vcombine.low %v1803_v19, %v1819_v23  ;;  %v1837_v27 = vcombine.high %v1803_v19, %v1819_v23  ;;  %v2395_v18 = vld [vmem:[%s3540_s7] ss:$0 sm:$0xff] }
 0x51c   : > { %v2396_v20 = vld [vmem:[%s3541_s8] ss:$0 sm:$0xff] }
 0x51d   : > { %v1828_v31 = vrot.slane %v1820_v24, %v3200_v36  ;;  %v1835_v32 = vrot.slane %v1821_v25, %v3200_v36  ;;  %v1844_v33 = vrot.slane %v1836_v26, %v3200_v36  ;;  %v1851_v37 = vrot.slane %v1837_v27, %v3200_v36  ;;  %v2664_v26 = vld [vmem:[%s3544_s11 + $0x10] sm:$0xff]   ;;  %v2665_v27 = vld [vmem:[%s3544_s11 + $0x18] sm:$0xff]  }
 0x51f   : > { %v1856_v38 = vcombine.low %v1828_v31, %v1835_v32  ;;  %v2390_v43 = vcombine.high %v1828_v31, %v1835_v32  ;;  %v1872_v45 = vcombine.low %v1844_v33, %v1851_v37  ;;  %v2391_v49 = vcombine.high %v1844_v33, %v1851_v37 }
 0x521   : > { %v1863_v52 = vrot.slane %v1856_v38, %v3198_v29  ;;  %v1871_v53 = vrot.slane %v2390_v43, %v3198_v29  ;;  %v1879_v55 = vrot.slane %v1872_v45, %v3198_v29  ;;  %v1887_v56 = vrot.slane %v2391_v49, %v3198_v29 }
 0x523   : > { %v1889_v57 = vcombine.high %v1863_v52, %v1871_v53  ;;  %v1905_v58 = vcombine.high %v1879_v55, %v1887_v56  ;;  %v1888_v59 = vcombine.low %v1863_v52, %v1871_v53  ;;  %v1904_v60 = vcombine.low %v1879_v55, %v1887_v56 }
 0x525   : > { %v1903_v61 = vrot.slane %v1889_v57, %v3200_v36  ;;  %v1919_v62 = vrot.slane %v1905_v58, %v3200_v36  ;;  %v1896_v1 = vrot.slane %v1888_v59, %v3200_v36  ;;  %v1912_v2 = vrot.slane %v1904_v60, %v3200_v36 }
 0x527   : > { %v1922_v3 = vcombine.low %v1903_v61, %v1919_v62  ;;  %v1921_v4 = vcombine.high %v1896_v1, %v1912_v2  ;;  %v1920_v5 = vcombine.low %v1896_v1, %v1912_v2  ;;  %v1923_v29 = vcombine.high %v1903_v61, %v1919_v62 }
 0x529   : > { %1929 = vrot.lane.b32.xlu1 %v1922_v3, %s2894_s5  ;;  %1925 = vrot.lane.b32.xlu0 %v1921_v4, %s2895_s13  ;;  %s3589_s13 = sld [smem:[#allocation30_spill]] }
 0x52d   : > { %1933 = vrot.lane.b32.xlu0 %v1923_v29, %s2896_s20 }
 0x52f   : > { %s3485_s20 = scalar_lea.hbm %s3589_s13, %s2410_s0 }
 0x59b   : > { %v1926_v10 = vpop.permute.xlu0 %1925  ;;  %v1930_v11 = vpop.permute.xlu1 %1929 }
 0x59c   : > { %v1936_v6 = vsel %vm804_vm2, %v1920_v5, %v1926_v10  ;;  %v2407_v10 = vld [vmem:[%s3587_s23] ss:$0 sm:$0xff] }
 0x59d   : > { %v1938_v28 = vsel %vm1937_vm7, %v1936_v6, %v1930_v11  ;;  %v2408_v6 = vld [vmem:[%s3588_s21] ss:$0 sm:$0xff] }
 0x59f   : > { %v1934_v22 = vpop.permute.xlu0 %1933 }
 0x5a0   : > { %v1940_v36 = vsel %vm1939_vm8, %v1938_v28, %v1934_v22 }
 0x5a1   : > { %v1941_v63 = vpack.c.bf16 %v1940_v36, %v1940_v36 }
 0x5a3   : > { %2526 = vmatmul.mubr.msk.bf16.vlgmr.msra.gmra.mrb[20].mxu1 %vm596_vm1, %v1941_v63 }
 0x5a4   : > { %2545 = vmatprep.mubr.msk.bf16.mxu1 %vm2886_vm0, %v2885_v0  ;;  %2538 = vmatpush3.bf16.msra.mxu1 %v2662_v54 }
 0x5a5   : > { %2539 = vmatprep.subr.bf16.mxu1 %v2885_v0 }
 0x5a8   : > { %2540 = vmatpush3.bf16.msra.mxu1 %v2663_v12 }
 0x5a9   : > { %2541 = vmatprep.subr.bf16.mxu1 %v2885_v0 }
 0x5ac   : > { %2542 = vmatpush3.bf16.msra.mxu1 %v2664_v26 }
 0x5ad   : > { %2543 = vmatprep.subr.bf16.mxu1 %v2885_v0  ;;  %v2401_v0 = vld [vmem:[%s3545_s12] ss:$0 sm:$0xff] }
 0x5b0   : > { %2544 = vmatpush3.bf16.msra.mxu1 %v2665_v27 }
 0x676   : > { %v1996_v35 = vpop.f32.mrb[20].mxu1 }
 0x677   : > { %v1997_v42 = vadd.f32 %v2694_v40, %v1996_v35  ;;  %v2527_v7 = vpop.f32.mrb[21].mxu1 }
 0x678   : > { %v1999_v8 = vpop.f32.mrb[22].mxu1 }
 0x679   : > { %v2528_v9 = vpop.f32.mrb[23].mxu1  ;;  %v2004_v44 = vsel %vm596_vm1, %v1997_v42, 0.0  ;;  %v2007_v46 = vmul.f32 %v1997_v42, %v1997_v42 }
 0x67a   : > { %2005 = vadd.xlane.f32.xlu1 %v2004_v44 }
 0x67b   : > { %v2008_v48 = vsel %vm596_vm1, %v2007_v46, 0.0 }
 0x67c   : > { %2009 = vadd.xlane.f32.xlu0 %v2008_v48 }
 0x707   : > { %v2006_v13 = vpop.xlane.xlu1 %2005 }
 0x708   : > { %v2011_v14 = vmul.f32 0.03125, %v2006_v13 }
 0x709   : > { %v2010_v15 = vpop.xlane.xlu0 %2009 }
 0x70a   : > { %v2013_v21 = vmul.f32 %v2011_v14, %v2011_v14  ;;  %v2012_v16 = vmul.f32 0.03125, %v2010_v15  ;;  %v2015_v39 = vsub.f32 %v1997_v42, %v2011_v14 }
 0x70c   : > { %v2014_v17 = vsub.f32 %v2012_v16, %v2013_v21 }
 0x70e   : > { %v2016_v34 = vadd.f32 1e-06, %v2014_v17 }
 0x710   : > { %2690 = vrsqrt.f32 %v2016_v34 }
 0x71a   : > { %v2691_v41 = vpop.eup %2690 }
 0x71b   : > { %v2018_v19 = vmul.f32 %v2691_v41, %v2015_v39 }
 0x71d   : > { %v2025_v23 = vmul.f32 %v2395_v18, %v2018_v19 }
 0x71f   : > { %v2032_v24 = vadd.f32 %v2396_v20, %v2025_v23 }
 0x721   : > { %v2033_v25 = vpack.c.bf16 %v2032_v24, %v2032_v24 }
 0x723   : > { %2534 = vmatmul.mubr.msk.bf16.vlgmr.msra.gmra.mrb[24].mxu0 %vm596_vm1, %v2033_v25 }
 0x7f6   : > { %v2094_v31 = vpop.f32.mrb[24].mxu0 }
 0x7f7   : > { %v2095_v32 = vadd.f32 %v2397_v30, %v2094_v31  ;;  %v2535_v33 = vpop.f32.mrb[25].mxu0 }
 0x7f8   : > { %v2097_v37 = vpop.f32.mrb[26].mxu0 }
 0x7f9   : > { %v2100_v38 = vmax.f32 %v2095_v32, 0.0  ;;  %v2536_v43 = vpop.f32.mrb[27].mxu0 }
 0x7fb   : > { %v2101_v45 = vpack.c.bf16 %v2100_v38, %v2100_v38 }
 0x7fd   : > { %2546 = vmatmul.mubr.msk.bf16.vlgmr.msra.gmra.mrb[24].mxu1 %vm2141_vm9, %v2101_v45 }
 0x8d0   : > { %v2179_v49 = vpop.f32.mrb[24].mxu1 }
 0x8d1   : > { %v2180_v50 = vadd.f32 %v2401_v0, %v2179_v49  ;;  %v2547_v52 = vpop.f32.mrb[25].mxu1 }
 0x8d2   : > { %v2182_v53 = vpop.f32.mrb[26].mxu1 }
 0x8d3   : > { %v2185_v55 = vadd.f32 %v2180_v50, %v2032_v24  ;;  %v2548_v56 = vpop.f32.mrb[27].mxu1 }
 0x8d5   : > { %v2188_v57 = vsel %vm596_vm1, %v2185_v55, 0.0  ;;  %v2191_v58 = vmul.f32 %v2185_v55, %v2185_v55 }
 0x8d6   : > { %2189 = vadd.xlane.f32.xlu0 %v2188_v57 }
 0x8d7   : > { %v2192_v59 = vsel %vm596_vm1, %v2191_v58, 0.0 }
 0x8d8   : > { %2193 = vadd.xlane.f32.xlu1 %v2192_v59 }
 0x963   : > { %v2190_v60 = vpop.xlane.xlu0 %2189 }
 0x964   : > { %v2195_v61 = vmul.f32 0.03125, %v2190_v60 }
 0x965   : > { %v2194_v62 = vpop.xlane.xlu1 %2193 }
 0x966   : > { %v2197_v1 = vmul.f32 %v2195_v61, %v2195_v61  ;;  %v2196_v2 = vmul.f32 0.03125, %v2194_v62  ;;  %v2199_v5 = vsub.f32 %v2185_v55, %v2195_v61 }
 0x968   : > { %v2198_v3 = vsub.f32 %v2196_v2, %v2197_v1 }
 0x96a   : > { %v2200_v4 = vadd.f32 1e-06, %v2198_v3 }
 0x96c   : > { %2692 = vrsqrt.f32 %v2200_v4 }
 0x976   : > { %v2693_v29 = vpop.eup %2692 }
 0x977   : > { %v2202_v11 = vmul.f32 %v2693_v29, %v2199_v5 }
 0x979   : > { %v2209_v22 = vmul.f32 %v2407_v10, %v2202_v11 }
 0x97b   : > { %v2216_v28 = vadd.f32 %v2408_v6, %v2209_v22 }
 0x97d   : > { %2217 = vst.msk [vmem:[%s557_s30] sm:$0xff] %vm596_vm1, %v2216_v28 }
 0x97e   : > { %2802 = shalt.err (!%p2799_p9)
}
 0x97f   : > { %s2803_s27 = scalar_lea.hbm %s3485_s20, 128  ;;  %s2807_s18 = scalar_lea.hbm %s3589_s13, 256 }
 0x980   : > { %p2804_p10 = scmp.ne.s32.totalorder %s3485_s20, %s2803_s27  ;;  %p2808_p7 = scmp.lt.u32.totalorder %s3485_s20, %s3589_s13 }
 0x981   : > { %p2809_p4 = scmp.lt.u32.totalorder %s2807_s18, %s2803_s27  ;;  %p2811_p2 = scmp.lt.u32.totalorder %s2803_s27, %s3485_s20 }
 0x982   : > { %p2805_p12 = pnand %p2804_p10, %p3590_p13 }
 0x983   : > { %p2810_p11 = por %p2809_p4, %p2808_p7 }
 0x984   : > { %p2806_p1 = pneg %p2805_p12 }
 0x985   : > { %p2812_p0 = por %p2811_p2, %p2810_p11 }
 0x987   : > { %p2813_p3 = pnand %p2812_p0, %p2806_p1 }
 0x989   : > { %2816 = shalt.err (!%p2813_p3)
}
 0x98a   : > { %2561 = dma.vmem_to_hbm [thread:$0]  (%p3590_p13), %s3487_s15, 128, %s3485_s20, %s2219_s26  }
 0x98b PF: > { %s3591_s0 = sld [smem:[#allocation22_spill]]  ;;  %s3592_s30 = sld [smem:[#allocation19_spill]] }
 0x98c   : > { %s3593_s17 = sld [smem:[#allocation25_spill]] }
 0x991   : > { %p2583_p5 = scmp.ge.s32.totalorder %s3591_s0, 2  ;;  %s2245_s5 = sand.u32 1, %s3592_s30  }
 0x992   : > { %p3594_p6 = scmp.ne.s32.totalorder %s3593_s17, 0  ;;  %s2246_s19 = scalar_lea.sflag [#allocation10], %s2245_s5 }
 0x994   : > { %p2574_p8 = pnand %p2583_p5, %p3594_p6 }
 0x996   : > { %2852 = dma.done.wait (!%p2574_p8), %s2246_s19, 128  }
 0x997   : > { %2854 = vsyncadd (!%p2574_p8), %s2246_s19, 4294967168  ;;  %s34_s18 = sadd.s32 1, %s3591_s0   ;;  %s3595_s16 = sld [smem:[#allocation20_spill]] }
 0x998   : > { %p31_p9 = scmp.ge.s32.totalorder %s34_s18, 4   ;;  %s3596_s30 = sld [smem:[#allocation26_spill]] }
 0x999   : > { %s3597_s24 = sld [smem:[#allocation21_spill]]  ;;  %s3598_s17 = sld [smem:[#allocation23_spill]] }
 0x99a   : > { %s3599_s28 = smov %s2861_s29  ;;  %33 = sbr.rel (!%p31_p9) target bundleno = 19 (0x13), region = 135 }
 0x99d   : > { %s3600_s29 = smov %s3595_s16 }
 0x99f   : > { %s3601_s16 = smov %s3597_s24 }
 0x9a1   :  { %2251 = vsyncpa [#allocation9], 1 }
 0x9a2   :  { %2253 = vsyncpa [#allocation9 + $0x1], 1 }
 0x9a3   :  { %2254 = vsyncpa [#allocation12], 1 }
 0x9a4   :  { %2255 = vsyncpa [#allocation10], 1 }
 0x9a5   :  { %2257 = vsyncpa [#allocation10 + $0x1], 1 }

</bundles_post_ra>
